<compile_context>
chip_gen: v5e
topology: v5e:2x2
jax: 0.10.0
libtpu: 0.0.40
codegen_flags: <defaults>
</compile_context>

<pallas_src>
import math
import jax
import jax.numpy as jnp
from jax.experimental import pallas as pl
from jax.experimental.pallas import tpu as pltpu

# ----------------------------- configuration ------------------------------
B       = 2     # batch
T       = 64    # waveform length
C       = 32    # n_residual_channels
K       = 3     # residual conv kernel size
L       = 4     # n_residual_layers
CYCLE   = 2     # dilation_cycle_length
DDIM    = 32    # diffusion_dim
EMB     = 16    # sinusoidal embedding width (2 * half_dim)
MAXSTEP = 50    # diffusion embedding table length
IN_CH   = 1     # input_channels (forward does input_.unsqueeze(1) -> 1 channel)

M = B * T       # batch*time folded onto the lane axis (single kernel invocation)

# Static sanity: the conv halo must stay inside one batch element (then the
# roll wraparound only ever lands on masked lanes), and M=128 keeps every
# activation vreg lane-dense.
_MAX_PAD = (2 ** (CYCLE - 1)) * (K - 1) // 2
assert _MAX_PAD < T, "conv halo larger than one batch element"
assert M % 128 == 0, "fold batch*time to a multiple of 128 lanes"

INV_SQRT2 = 1.0 / math.sqrt(2.0)
INV_SQRTL = 1.0 / math.sqrt(L)


# ------------------------------ Pallas kernel -----------------------------
def diffwave_kernel(x_ref, dstep_ref,
                    w_in_ref, b_in_ref,
                    conv_w_ref, conv_b_ref,
                    out_w_ref, out_b_ref,
                    skip_w_ref, skip_b_ref,
                    fin_w_ref, fin_b_ref,
                    o_ref):
    # input_projection (1x1 conv, 1 -> C) + ReLU; channels land on sublanes.
    x = x_ref[...]                                               # (1, M) lane-dense
    h = jnp.maximum(w_in_ref[...] * x + b_in_ref[...], 0.0)      # (C, M)

    # {0,1} boundary masks for the dilated-conv tap shifts (computed once; the
    # set of nonzero tap offsets is static).  time index = lane % T.
    t_idx = jax.lax.broadcasted_iota(jnp.int32, (1, M), 1) % T
    tap_offs = sorted({k * (2 ** (l % CYCLE)) - (2 ** (l % CYCLE)) * (K - 1) // 2
                       for l in range(L) for k in range(K)} - {0})
    masks = {off: ((t_idx + off >= 0) & (t_idx + off < T)).astype(jnp.float32)
             for off in tap_offs}

    skip = None
    for l in range(L):                                           # unrolled residual stack
        dil = 2 ** (l % CYCLE)
        pad = dil * (K - 1) // 2

        # diffusion_projection is precomputed in the wrapper (batch independent)
        y = h + dstep_ref[l]                                     # (C, M) + (C, 1)

        # dilated "same" Conv1d(C -> 2C): each tap is a static lane roll of y,
        # masked at the per-batch-element time boundaries; taps stack along
        # sublanes (vreg aligned) and gate|filter halves are fused along the
        # output rows -> one (2C, K*C) x (K*C, M) MXU matmul per layer.
        taps = []
        for k in range(K):
            off = k * dil - pad
            if off == 0:
                taps.append(y)
            else:
                taps.append(pltpu.roll(y, (-off) % M, 1) * masks[off])
        ys = jnp.concatenate(taps, axis=0).astype(jnp.bfloat16)  # (K*C, M)

        acc = jnp.dot(conv_w_ref[l], ys,
                      preferred_element_type=jnp.float32) + conv_b_ref[l]    # (2C, M)
        z = jax.nn.sigmoid(acc[:C]) * jnp.tanh(acc[C:])          # gated activation (C, M)

        # output_projection (1x1 conv, C -> 2C), residual|skip fused along rows.
        oz = jnp.dot(out_w_ref[l], z.astype(jnp.bfloat16),
                     preferred_element_type=jnp.float32) + out_b_ref[l]      # (2C, M)
        h = (h + oz[:C]) * INV_SQRT2
        sk = oz[C:]
        skip = sk if skip is None else skip + sk                 # register-resident

    xs = skip * INV_SQRTL
    # skip_projection (1x1 conv, C -> C) + ReLU
    xs = jnp.maximum(jnp.dot(skip_w_ref[...], xs.astype(jnp.bfloat16),
                             preferred_element_type=jnp.float32) + skip_b_ref[...], 0.0)
    # output_projection (1x1 conv, C -> 1): cross-sublane reduce -> (1, M) lane-dense.
    o_ref[...] = jnp.sum(xs * fin_w_ref[...], axis=0, keepdims=True) + fin_b_ref[...]


# ------------------------------- parameters -------------------------------
def init_params(key):
    ks = jax.random.split(key, 20)
    r = lambda k, shape: (0.1 * jax.random.normal(k, shape)).astype(jnp.float32)
    p = {}
    p["w_in"]    = r(ks[0], (1, C))          # input_projection weight (Cin=1)
    p["b_in"]    = r(ks[1], (1, C))
    p["conv_wg"] = r(ks[2], (L, K, C, C))    # dilated conv, gate half   (tap, Cin, Cout)
    p["conv_wf"] = r(ks[3], (L, K, C, C))    # dilated conv, filter half
    p["conv_bg"] = r(ks[4], (L, 1, C))
    p["conv_bf"] = r(ks[5], (L, 1, C))
    p["diff_w"]  = r(ks[6], (L, DDIM, C))    # diffusion_projection (Linear) per layer
    p["diff_b"]  = r(ks[7], (L, 1, C))
    p["out_wr"]  = r(ks[8], (L, C, C))       # residual half of output_projection
    p["out_ws"]  = r(ks[9], (L, C, C))       # skip half of output_projection
    p["out_br"]  = r(ks[10], (L, 1, C))
    p["out_bs"]  = r(ks[11], (L, 1, C))
    p["skip_w"]  = r(ks[12], (C, C))
    p["skip_b"]  = r(ks[13], (1, C))
    # NOTE: the PyTorch module zero-inits output_projection.weight at
    # construction; a random value is used here so the test actually exercises
    # the residual/conv/skip datapath (forward semantics are unchanged).
    p["fin_w"]   = r(ks[19], (1, C))
    p["fin_b"]   = r(ks[14], (1, 1))
    # standard DiffWave DiffusionEmbedding MLP
    p["p1_w"] = r(ks[15], (EMB, DDIM))
    p["p1_b"] = r(ks[16], (DDIM,))
    p["p2_w"] = r(ks[17], (DDIM, DDIM))
    p["p2_b"] = r(ks[18], (DDIM,))
    return p


# ---------------------- diffusion embedding (plain-JAX glue) --------------
def diffusion_embedding(step, p):
    # TODO(synk): DiffusionParams.embedding is not given in the source; this
    # reproduces the standard DiffWave sinusoidal table + 2x(Linear, SiLU).
    half = EMB // 2
    steps = jnp.arange(MAXSTEP, dtype=jnp.float32)[:, None]
    dims = jnp.arange(half, dtype=jnp.float32)[None, :]
    table = steps * 10.0 ** (dims * 4.0 / (half - 1))
    table = jnp.concatenate([jnp.sin(table), jnp.cos(table)], axis=1)   # (MAXSTEP, EMB)
    e = table[step]
    e = jax.nn.silu(e @ p["p1_w"] + p["p1_b"])
    e = jax.nn.silu(e @ p["p2_w"] + p["p2_b"])
    return e                                                            # (DDIM,)


# ------------------------------- wrapper -----------------------------------
def _full_spec(a):
    nd = a.ndim
    return pl.BlockSpec(a.shape, lambda *_, _nd=nd: (0,) * _nd)


def diffwave_forward(input_, diffusion_step, params):
    # Step-only (batch independent) work stays in plain JAX: the diffusion
    # embedding MLP and each layer's diffusion_projection Linear (M=1 matmuls).
    demb = diffusion_embedding(diffusion_step, params)                        # (DDIM,)
    dstep = jnp.einsum("d,ldc->lc", demb, params["diff_w"]) \
            + params["diff_b"][:, 0, :]                                       # (L, C)
    dstep = dstep[:, :, None]                                                 # (L, C, 1)

    # Transpose every weight to the channels-on-sublanes layout (out-channels
    # on rows, contraction on columns).  Dilated conv: rows = gate|filter
    # fused, columns tap-major / c_in-minor; output projection: rows =
    # residual|skip fused.  Matmul operands are bf16; biases stay f32 columns.
    conv_wg = jnp.transpose(params["conv_wg"], (0, 3, 1, 2)).reshape(L, C, K * C)
    conv_wf = jnp.transpose(params["conv_wf"], (0, 3, 1, 2)).reshape(L, C, K * C)
    conv_w = jnp.concatenate([conv_wg, conv_wf], axis=1).astype(jnp.bfloat16)   # (L, 2C, K*C)
    conv_b = jnp.transpose(jnp.concatenate([params["conv_bg"], params["conv_bf"]],
                                           axis=-1), (0, 2, 1))                 # (L, 2C, 1)
    out_w = jnp.concatenate([jnp.transpose(params["out_wr"], (0, 2, 1)),
                             jnp.transpose(params["out_ws"], (0, 2, 1))],
                            axis=1).astype(jnp.bfloat16)                        # (L, 2C, C)
    out_b = jnp.transpose(jnp.concatenate([params["out_br"], params["out_bs"]],
                                          axis=-1), (0, 2, 1))                  # (L, 2C, 1)
    skip_w = params["skip_w"].T.astype(jnp.bfloat16)                            # (C, C)
    skip_b = params["skip_b"].T                                                 # (C, 1)
    w_in  = params["w_in"].T                                                    # (C, 1)
    b_in  = params["b_in"].T                                                    # (C, 1)
    fin_w = params["fin_w"].T                                                   # (C, 1)
    fin_b = params["fin_b"]                                                     # (1, 1)

    x_row = input_.astype(jnp.float32).reshape(1, M)    # lane-dense, batch*time on lanes

    args = (x_row, dstep, w_in, b_in, conv_w, conv_b, out_w, out_b,
            skip_w, skip_b, fin_w, fin_b)

    # Single invocation, batch folded onto lanes (M = B*T = 128 fills one vreg).
    # TODO(synk): for audio-scale T, tile T over a "parallel" grid axis (halo
    # handled by the tap masks) to use both v7x TensorCores and bound VMEM.
    out = pl.pallas_call(
        diffwave_kernel,
        out_shape=jax.ShapeDtypeStruct((1, M), jnp.float32),
        in_specs=[_full_spec(a) for a in args],
        out_specs=pl.BlockSpec((1, M), lambda *_: (0, 0)),
    )(*args)
    return out.reshape(B, IN_CH, T)                     # (B, 1, T) == PyTorch NCT


# ------------------------- plain-JAX reference (check) ---------------------
def diffwave_reference(input_, diffusion_step, params):
    demb = diffusion_embedding(diffusion_step, params)        # (DDIM,)
    x = input_[:, :, None].astype(jnp.float32)                # (B, T, 1)
    h = jnp.maximum(x * params["w_in"] + params["b_in"], 0.0) # (B, T, C)
    skip = jnp.zeros((B, T, C), jnp.float32)
    for l in range(L):
        dil = 2 ** (l % CYCLE)
        pad = dil * (K - 1) // 2
        dstep = demb @ params["diff_w"][l] + params["diff_b"][l]       # (1, C)
        y = h + dstep[None]
        yp = jnp.pad(y, ((0, 0), (pad, pad), (0, 0)))
        acc_g = jnp.zeros((B, T, C), jnp.float32)
        acc_f = jnp.zeros((B, T, C), jnp.float32)
        for k in range(K):
            ys = yp[:, k * dil: k * dil + T, :]
            acc_g += ys @ params["conv_wg"][l, k]
            acc_f += ys @ params["conv_wf"][l, k]
        acc_g += params["conv_bg"][l]
        acc_f += params["conv_bf"][l]
        z = jax.nn.sigmoid(acc_g) * jnp.tanh(acc_f)
        residual = z @ params["out_wr"][l] + params["out_br"][l]
        sk = z @ params["out_ws"][l] + params["out_bs"][l]
        h = (h + residual) / math.sqrt(2.0)
        skip = skip + sk
    xs = skip / math.sqrt(L)
    xs = jnp.maximum(xs @ params["skip_w"] + params["skip_b"], 0.0)
    out = jnp.sum(xs * params["fin_w"], axis=-1, keepdims=True) + params["fin_b"]
    return jnp.transpose(out, (0, 2, 1))                      # (B, 1, T)


# --------------------------------- main -------------------------------------
if __name__ == "__main__":
    key = jax.random.PRNGKey(0)
    pkey, xkey = jax.random.split(key)
    params = init_params(pkey)
    input_ = jax.random.normal(xkey, (B, T), dtype=jnp.float32)   # waveform (B, T)
    diffusion_step = 7                                            # int step

    out = jax.block_until_ready(diffwave_forward(input_, diffusion_step, params))
    ref = diffwave_reference(input_, diffusion_step, params)

    assert out.shape == (B, IN_CH, T), out.shape
    assert bool(jnp.all(jnp.isfinite(out)))
    # Kernel uses bf16 MXU operands (f32 accumulate); reference is full f32.
    assert jnp.allclose(out, ref, atol=2e-2, rtol=2e-2), \
        float(jnp.max(jnp.abs(out - ref)))
    print("KERNEL_OK")
</pallas_src>

<mosaic_0001>
module attributes {stable_mosaic.version = 11 : i64} {
  func.func @diffwave_kernel(%arg0: memref<1x128xf32, #tpu.memory_space<vmem>>, %arg1: memref<4x32x1xf32, #tpu.memory_space<vmem>>, %arg2: memref<32x1xf32, #tpu.memory_space<vmem>>, %arg3: memref<32x1xf32, #tpu.memory_space<vmem>>, %arg4: memref<4x64x96xbf16, #tpu.memory_space<vmem>>, %arg5: memref<4x64x1xf32, #tpu.memory_space<vmem>>, %arg6: memref<4x64x32xbf16, #tpu.memory_space<vmem>>, %arg7: memref<4x64x1xf32, #tpu.memory_space<vmem>>, %arg8: memref<32x32xbf16, #tpu.memory_space<vmem>>, %arg9: memref<32x1xf32, #tpu.memory_space<vmem>>, %arg10: memref<32x1xf32, #tpu.memory_space<vmem>>, %arg11: memref<1x1xf32, #tpu.memory_space<vmem>>, %arg12: memref<1x128xf32, #tpu.memory_space<vmem>>) attributes {dimension_semantics = [], scalar_prefetch = 0 : i64, scratch_operands = 0 : i64, tpu.core_type = #tpu.core_type<tc>} {
    %c0 = arith.constant 0 : index
    %c0_0 = arith.constant 0 : index
    %0 = vector.load %arg0[%c0, %c0_0] : memref<1x128xf32, #tpu.memory_space<vmem>>, vector<1x128xf32>
    %c0_1 = arith.constant 0 : index
    %c0_2 = arith.constant 0 : index
    %1 = vector.load %arg2[%c0_1, %c0_2] : memref<32x1xf32, #tpu.memory_space<vmem>>, vector<32x1xf32>
    %2 = vector.broadcast %1 : vector<32x1xf32> to vector<32x128xf32>
    %3 = vector.broadcast %0 : vector<1x128xf32> to vector<32x128xf32>
    %4 = arith.mulf %2, %3 : vector<32x128xf32>
    %c0_3 = arith.constant 0 : index
    %c0_4 = arith.constant 0 : index
    %5 = vector.load %arg3[%c0_3, %c0_4] : memref<32x1xf32, #tpu.memory_space<vmem>>, vector<32x1xf32>
    %6 = vector.broadcast %5 : vector<32x1xf32> to vector<32x128xf32>
    %7 = arith.addf %4, %6 : vector<32x128xf32>
    %cst = arith.constant 0.000000e+00 : f32
    %8 = vector.broadcast %cst : f32 to vector<32x128xf32>
    %9 = arith.maximumf %7, %8 : vector<32x128xf32>
    %10 = tpu.iota {dimensions = array<i32: 1>} : vector<1x128xi32>
    %c64_i32 = arith.constant 64 : i32
    %c0_i32 = arith.constant 0 : i32
    %11 = arith.cmpi eq, %c64_i32, %c0_i32 : i32
    %c1_i32 = arith.constant 1 : i32
    %12 = arith.select %11, %c1_i32, %c64_i32 : i32
    %13 = vector.broadcast %12 : i32 to vector<1x128xi32>
    %14 = arith.remsi %10, %13 : vector<1x128xi32>
    %c0_i32_5 = arith.constant 0 : i32
    %15 = vector.broadcast %c0_i32_5 : i32 to vector<1x128xi32>
    %16 = arith.cmpi ne, %14, %15 : vector<1x128xi32>
    %c0_i32_6 = arith.constant 0 : i32
    %17 = vector.broadcast %c0_i32_6 : i32 to vector<1x128xi32>
    %18 = arith.cmpi slt, %14, %17 : vector<1x128xi32>
    %c0_i32_7 = arith.constant 0 : i32
    %19 = arith.cmpi slt, %12, %c0_i32_7 : i32
    %20 = vector.broadcast %19 : i1 to vector<1x128xi1>
    %21 = vector.broadcast %20 : vector<1x128xi1> to vector<1x128xi1>
    %22 = arith.xori %18, %21 : vector<1x128xi1>
    %23 = arith.andi %22, %16 : vector<1x128xi1>
    %24 = vector.broadcast %12 : i32 to vector<1x128xi32>
    %25 = arith.addi %14, %24 : vector<1x128xi32>
    %26 = arith.select %23, %25, %14 : vector<1x128xi1>, vector<1x128xi32>
    %c-2_i32 = arith.constant -2 : i32
    %27 = vector.broadcast %c-2_i32 : i32 to vector<1x128xi32>
    %28 = arith.addi %26, %27 : vector<1x128xi32>
    %c0_i32_8 = arith.constant 0 : i32
    %29 = vector.broadcast %c0_i32_8 : i32 to vector<1x128xi32>
    %30 = arith.cmpi sge, %28, %29 : vector<1x128xi32>
    %c-2_i32_9 = arith.constant -2 : i32
    %31 = vector.broadcast %c-2_i32_9 : i32 to vector<1x128xi32>
    %32 = arith.addi %26, %31 : vector<1x128xi32>
    %c64_i32_10 = arith.constant 64 : i32
    %33 = vector.broadcast %c64_i32_10 : i32 to vector<1x128xi32>
    %34 = arith.cmpi slt, %32, %33 : vector<1x128xi32>
    %35 = arith.andi %30, %34 : vector<1x128xi1>
    %36 = arith.extui %35 : vector<1x128xi1> to vector<1x128xi32>
    %37 = arith.sitofp %36 : vector<1x128xi32> to vector<1x128xf32>
    %c-1_i32 = arith.constant -1 : i32
    %38 = vector.broadcast %c-1_i32 : i32 to vector<1x128xi32>
    %39 = arith.addi %26, %38 : vector<1x128xi32>
    %c0_i32_11 = arith.constant 0 : i32
    %40 = vector.broadcast %c0_i32_11 : i32 to vector<1x128xi32>
    %41 = arith.cmpi sge, %39, %40 : vector<1x128xi32>
    %c-1_i32_12 = arith.constant -1 : i32
    %42 = vector.broadcast %c-1_i32_12 : i32 to vector<1x128xi32>
    %43 = arith.addi %26, %42 : vector<1x128xi32>
    %c64_i32_13 = arith.constant 64 : i32
    %44 = vector.broadcast %c64_i32_13 : i32 to vector<1x128xi32>
    %45 = arith.cmpi slt, %43, %44 : vector<1x128xi32>
    %46 = arith.andi %41, %45 : vector<1x128xi1>
    %47 = arith.extui %46 : vector<1x128xi1> to vector<1x128xi32>
    %48 = arith.sitofp %47 : vector<1x128xi32> to vector<1x128xf32>
    %c1_i32_14 = arith.constant 1 : i32
    %49 = vector.broadcast %c1_i32_14 : i32 to vector<1x128xi32>
    %50 = arith.addi %26, %49 : vector<1x128xi32>
    %c0_i32_15 = arith.constant 0 : i32
    %51 = vector.broadcast %c0_i32_15 : i32 to vector<1x128xi32>
    %52 = arith.cmpi sge, %50, %51 : vector<1x128xi32>
    %c1_i32_16 = arith.constant 1 : i32
    %53 = vector.broadcast %c1_i32_16 : i32 to vector<1x128xi32>
    %54 = arith.addi %26, %53 : vector<1x128xi32>
    %c64_i32_17 = arith.constant 64 : i32
    %55 = vector.broadcast %c64_i32_17 : i32 to vector<1x128xi32>
    %56 = arith.cmpi slt, %54, %55 : vector<1x128xi32>
    %57 = arith.andi %52, %56 : vector<1x128xi1>
    %58 = arith.extui %57 : vector<1x128xi1> to vector<1x128xi32>
    %59 = arith.sitofp %58 : vector<1x128xi32> to vector<1x128xf32>
    %c2_i32 = arith.constant 2 : i32
    %60 = vector.broadcast %c2_i32 : i32 to vector<1x128xi32>
    %61 = arith.addi %26, %60 : vector<1x128xi32>
    %c0_i32_18 = arith.constant 0 : i32
    %62 = vector.broadcast %c0_i32_18 : i32 to vector<1x128xi32>
    %63 = arith.cmpi sge, %61, %62 : vector<1x128xi32>
    %c2_i32_19 = arith.constant 2 : i32
    %64 = vector.broadcast %c2_i32_19 : i32 to vector<1x128xi32>
    %65 = arith.addi %26, %64 : vector<1x128xi32>
    %c64_i32_20 = arith.constant 64 : i32
    %66 = vector.broadcast %c64_i32_20 : i32 to vector<1x128xi32>
    %67 = arith.cmpi slt, %65, %66 : vector<1x128xi32>
    %68 = arith.andi %63, %67 : vector<1x128xi1>
    %69 = arith.extui %68 : vector<1x128xi1> to vector<1x128xi32>
    %70 = arith.sitofp %69 : vector<1x128xi32> to vector<1x128xf32>
    %c0_21 = arith.constant 0 : index
    %c0_22 = arith.constant 0 : index
    %c0_23 = arith.constant 0 : index
    %71 = vector.load %arg1[%c0_21, %c0_22, %c0_23] : memref<4x32x1xf32, #tpu.memory_space<vmem>>, vector<1x32x1xf32>
    %72 = vector.shape_cast %71 : vector<1x32x1xf32> to vector<32x1xf32>
    %73 = vector.broadcast %72 : vector<32x1xf32> to vector<32x128xf32>
    %74 = arith.addf %9, %73 : vector<32x128xf32>
    %c1_i32_24 = arith.constant 1 : i32
    %75 = tpu.dynamic_rotate %74 by %c1_i32_24 dim 1 : vector<32x128xf32>, i32 -> vector<32x128xf32>
    %76 = vector.broadcast %48 : vector<1x128xf32> to vector<32x128xf32>
    %77 = arith.mulf %75, %76 : vector<32x128xf32>
    %c127_i32 = arith.constant 127 : i32
    %78 = tpu.dynamic_rotate %74 by %c127_i32 dim 1 : vector<32x128xf32>, i32 -> vector<32x128xf32>
    %79 = vector.broadcast %59 : vector<1x128xf32> to vector<32x128xf32>
    %80 = arith.mulf %78, %79 : vector<32x128xf32>
    %81 = tpu.concatenate %77, %74, %80 in 0 : vector<32x128xf32>, vector<32x128xf32>, vector<32x128xf32> -> vector<96x128xf32>
    %82 = arith.truncf %81 : vector<96x128xf32> to vector<96x128xbf16>
    %c0_25 = arith.constant 0 : index
    %c0_26 = arith.constant 0 : index
    %c0_27 = arith.constant 0 : index
    %83 = vector.load %arg4[%c0_25, %c0_26, %c0_27] : memref<4x64x96xbf16, #tpu.memory_space<vmem>>, vector<1x64x96xbf16>
    %84 = vector.shape_cast %83 : vector<1x64x96xbf16> to vector<64x96xbf16>
    %cst_28 = arith.constant dense<0.000000e+00> : vector<64x128xf32>
    %85 = tpu.matmul %84, %82, %cst_28 {dimension_numbers = #tpu.dot_dimension_numbers<[1], [0], [0], [1], [0, 0, 1, 1], [], []>} : vector<64x96xbf16>, vector<96x128xbf16>, vector<64x128xf32> -> vector<64x128xf32>
    %c0_29 = arith.constant 0 : index
    %c0_30 = arith.constant 0 : index
    %c0_31 = arith.constant 0 : index
    %86 = vector.load %arg5[%c0_29, %c0_30, %c0_31] : memref<4x64x1xf32, #tpu.memory_space<vmem>>, vector<1x64x1xf32>
    %87 = vector.shape_cast %86 : vector<1x64x1xf32> to vector<64x1xf32>
    %88 = vector.broadcast %87 : vector<64x1xf32> to vector<64x128xf32>
    %89 = arith.addf %85, %88 : vector<64x128xf32>
    %90 = vector.extract_strided_slice %89 {offsets = [0, 0], sizes = [32, 128], strides = [1, 1]} : vector<64x128xf32> to vector<32x128xf32>
    %91 = arith.negf %90 : vector<32x128xf32>
    %92 = math.exp %91 : vector<32x128xf32>
    %cst_32 = arith.constant 1.000000e+00 : f32
    %93 = vector.broadcast %cst_32 : f32 to vector<32x128xf32>
    %94 = arith.addf %93, %92 : vector<32x128xf32>
    %95 = arith.divf %93, %94 : vector<32x128xf32>
    %96 = vector.extract_strided_slice %89 {offsets = [32, 0], sizes = [32, 128], strides = [1, 1]} : vector<64x128xf32> to vector<32x128xf32>
    %97 = math.tanh %96 : vector<32x128xf32>
    %98 = arith.mulf %95, %97 : vector<32x128xf32>
    %c0_33 = arith.constant 0 : index
    %c0_34 = arith.constant 0 : index
    %c0_35 = arith.constant 0 : index
    %99 = vector.load %arg6[%c0_33, %c0_34, %c0_35] : memref<4x64x32xbf16, #tpu.memory_space<vmem>>, vector<1x64x32xbf16>
    %100 = vector.shape_cast %99 : vector<1x64x32xbf16> to vector<64x32xbf16>
    %101 = arith.truncf %98 : vector<32x128xf32> to vector<32x128xbf16>
    %cst_36 = arith.constant dense<0.000000e+00> : vector<64x128xf32>
    %102 = tpu.matmul %100, %101, %cst_36 {dimension_numbers = #tpu.dot_dimension_numbers<[1], [0], [0], [1], [0, 0, 1, 1], [], []>} : vector<64x32xbf16>, vector<32x128xbf16>, vector<64x128xf32> -> vector<64x128xf32>
    %c0_37 = arith.constant 0 : index
    %c0_38 = arith.constant 0 : index
    %c0_39 = arith.constant 0 : index
    %103 = vector.load %arg7[%c0_37, %c0_38, %c0_39] : memref<4x64x1xf32, #tpu.memory_space<vmem>>, vector<1x64x1xf32>
    %104 = vector.shape_cast %103 : vector<1x64x1xf32> to vector<64x1xf32>
    %105 = vector.broadcast %104 : vector<64x1xf32> to vector<64x128xf32>
    %106 = arith.addf %102, %105 : vector<64x128xf32>
    %107 = vector.extract_strided_slice %106 {offsets = [0, 0], sizes = [32, 128], strides = [1, 1]} : vector<64x128xf32> to vector<32x128xf32>
    %108 = arith.addf %9, %107 : vector<32x128xf32>
    %cst_40 = arith.constant 0.707106769 : f32
    %109 = vector.broadcast %cst_40 : f32 to vector<32x128xf32>
    %110 = arith.mulf %108, %109 : vector<32x128xf32>
    %111 = vector.extract_strided_slice %106 {offsets = [32, 0], sizes = [32, 128], strides = [1, 1]} : vector<64x128xf32> to vector<32x128xf32>
    %c1 = arith.constant 1 : index
    %c0_41 = arith.constant 0 : index
    %c0_42 = arith.constant 0 : index
    %112 = vector.load %arg1[%c1, %c0_41, %c0_42] : memref<4x32x1xf32, #tpu.memory_space<vmem>>, vector<1x32x1xf32>
    %113 = vector.shape_cast %112 : vector<1x32x1xf32> to vector<32x1xf32>
    %114 = vector.broadcast %113 : vector<32x1xf32> to vector<32x128xf32>
    %115 = arith.addf %110, %114 : vector<32x128xf32>
    %c2_i32_43 = arith.constant 2 : i32
    %116 = tpu.dynamic_rotate %115 by %c2_i32_43 dim 1 : vector<32x128xf32>, i32 -> vector<32x128xf32>
    %117 = vector.broadcast %37 : vector<1x128xf32> to vector<32x128xf32>
    %118 = arith.mulf %116, %117 : vector<32x128xf32>
    %c126_i32 = arith.constant 126 : i32
    %119 = tpu.dynamic_rotate %115 by %c126_i32 dim 1 : vector<32x128xf32>, i32 -> vector<32x128xf32>
    %120 = vector.broadcast %70 : vector<1x128xf32> to vector<32x128xf32>
    %121 = arith.mulf %119, %120 : vector<32x128xf32>
    %122 = tpu.concatenate %118, %115, %121 in 0 : vector<32x128xf32>, vector<32x128xf32>, vector<32x128xf32> -> vector<96x128xf32>
    %123 = arith.truncf %122 : vector<96x128xf32> to vector<96x128xbf16>
    %c1_44 = arith.constant 1 : index
    %c0_45 = arith.constant 0 : index
    %c0_46 = arith.constant 0 : index
    %124 = vector.load %arg4[%c1_44, %c0_45, %c0_46] : memref<4x64x96xbf16, #tpu.memory_space<vmem>>, vector<1x64x96xbf16>
    %125 = vector.shape_cast %124 : vector<1x64x96xbf16> to vector<64x96xbf16>
    %cst_47 = arith.constant dense<0.000000e+00> : vector<64x128xf32>
    %126 = tpu.matmul %125, %123, %cst_47 {dimension_numbers = #tpu.dot_dimension_numbers<[1], [0], [0], [1], [0, 0, 1, 1], [], []>} : vector<64x96xbf16>, vector<96x128xbf16>, vector<64x128xf32> -> vector<64x128xf32>
    %c1_48 = arith.constant 1 : index
    %c0_49 = arith.constant 0 : index
    %c0_50 = arith.constant 0 : index
    %127 = vector.load %arg5[%c1_48, %c0_49, %c0_50] : memref<4x64x1xf32, #tpu.memory_space<vmem>>, vector<1x64x1xf32>
    %128 = vector.shape_cast %127 : vector<1x64x1xf32> to vector<64x1xf32>
    %129 = vector.broadcast %128 : vector<64x1xf32> to vector<64x128xf32>
    %130 = arith.addf %126, %129 : vector<64x128xf32>
    %131 = vector.extract_strided_slice %130 {offsets = [0, 0], sizes = [32, 128], strides = [1, 1]} : vector<64x128xf32> to vector<32x128xf32>
    %132 = arith.negf %131 : vector<32x128xf32>
    %133 = math.exp %132 : vector<32x128xf32>
    %cst_51 = arith.constant 1.000000e+00 : f32
    %134 = vector.broadcast %cst_51 : f32 to vector<32x128xf32>
    %135 = arith.addf %134, %133 : vector<32x128xf32>
    %136 = arith.divf %134, %135 : vector<32x128xf32>
    %137 = vector.extract_strided_slice %130 {offsets = [32, 0], sizes = [32, 128], strides = [1, 1]} : vector<64x128xf32> to vector<32x128xf32>
    %138 = math.tanh %137 : vector<32x128xf32>
    %139 = arith.mulf %136, %138 : vector<32x128xf32>
    %c1_52 = arith.constant 1 : index
    %c0_53 = arith.constant 0 : index
    %c0_54 = arith.constant 0 : index
    %140 = vector.load %arg6[%c1_52, %c0_53, %c0_54] : memref<4x64x32xbf16, #tpu.memory_space<vmem>>, vector<1x64x32xbf16>
    %141 = vector.shape_cast %140 : vector<1x64x32xbf16> to vector<64x32xbf16>
    %142 = arith.truncf %139 : vector<32x128xf32> to vector<32x128xbf16>
    %cst_55 = arith.constant dense<0.000000e+00> : vector<64x128xf32>
    %143 = tpu.matmul %141, %142, %cst_55 {dimension_numbers = #tpu.dot_dimension_numbers<[1], [0], [0], [1], [0, 0, 1, 1], [], []>} : vector<64x32xbf16>, vector<32x128xbf16>, vector<64x128xf32> -> vector<64x128xf32>
    %c1_56 = arith.constant 1 : index
    %c0_57 = arith.constant 0 : index
    %c0_58 = arith.constant 0 : index
    %144 = vector.load %arg7[%c1_56, %c0_57, %c0_58] : memref<4x64x1xf32, #tpu.memory_space<vmem>>, vector<1x64x1xf32>
    %145 = vector.shape_cast %144 : vector<1x64x1xf32> to vector<64x1xf32>
    %146 = vector.broadcast %145 : vector<64x1xf32> to vector<64x128xf32>
    %147 = arith.addf %143, %146 : vector<64x128xf32>
    %148 = vector.extract_strided_slice %147 {offsets = [0, 0], sizes = [32, 128], strides = [1, 1]} : vector<64x128xf32> to vector<32x128xf32>
    %149 = arith.addf %110, %148 : vector<32x128xf32>
    %cst_59 = arith.constant 0.707106769 : f32
    %150 = vector.broadcast %cst_59 : f32 to vector<32x128xf32>
    %151 = arith.mulf %149, %150 : vector<32x128xf32>
    %152 = vector.extract_strided_slice %147 {offsets = [32, 0], sizes = [32, 128], strides = [1, 1]} : vector<64x128xf32> to vector<32x128xf32>
    %153 = arith.addf %111, %152 : vector<32x128xf32>
    %c2 = arith.constant 2 : index
    %c0_60 = arith.constant 0 : index
    %c0_61 = arith.constant 0 : index
    %154 = vector.load %arg1[%c2, %c0_60, %c0_61] : memref<4x32x1xf32, #tpu.memory_space<vmem>>, vector<1x32x1xf32>
    %155 = vector.shape_cast %154 : vector<1x32x1xf32> to vector<32x1xf32>
    %156 = vector.broadcast %155 : vector<32x1xf32> to vector<32x128xf32>
    %157 = arith.addf %151, %156 : vector<32x128xf32>
    %c1_i32_62 = arith.constant 1 : i32
    %158 = tpu.dynamic_rotate %157 by %c1_i32_62 dim 1 : vector<32x128xf32>, i32 -> vector<32x128xf32>
    %159 = vector.broadcast %48 : vector<1x128xf32> to vector<32x128xf32>
    %160 = arith.mulf %158, %159 : vector<32x128xf32>
    %c127_i32_63 = arith.constant 127 : i32
    %161 = tpu.dynamic_rotate %157 by %c127_i32_63 dim 1 : vector<32x128xf32>, i32 -> vector<32x128xf32>
    %162 = vector.broadcast %59 : vector<1x128xf32> to vector<32x128xf32>
    %163 = arith.mulf %161, %162 : vector<32x128xf32>
    %164 = tpu.concatenate %160, %157, %163 in 0 : vector<32x128xf32>, vector<32x128xf32>, vector<32x128xf32> -> vector<96x128xf32>
    %165 = arith.truncf %164 : vector<96x128xf32> to vector<96x128xbf16>
    %c2_64 = arith.constant 2 : index
    %c0_65 = arith.constant 0 : index
    %c0_66 = arith.constant 0 : index
    %166 = vector.load %arg4[%c2_64, %c0_65, %c0_66] : memref<4x64x96xbf16, #tpu.memory_space<vmem>>, vector<1x64x96xbf16>
    %167 = vector.shape_cast %166 : vector<1x64x96xbf16> to vector<64x96xbf16>
    %cst_67 = arith.constant dense<0.000000e+00> : vector<64x128xf32>
    %168 = tpu.matmul %167, %165, %cst_67 {dimension_numbers = #tpu.dot_dimension_numbers<[1], [0], [0], [1], [0, 0, 1, 1], [], []>} : vector<64x96xbf16>, vector<96x128xbf16>, vector<64x128xf32> -> vector<64x128xf32>
    %c2_68 = arith.constant 2 : index
    %c0_69 = arith.constant 0 : index
    %c0_70 = arith.constant 0 : index
    %169 = vector.load %arg5[%c2_68, %c0_69, %c0_70] : memref<4x64x1xf32, #tpu.memory_space<vmem>>, vector<1x64x1xf32>
    %170 = vector.shape_cast %169 : vector<1x64x1xf32> to vector<64x1xf32>
    %171 = vector.broadcast %170 : vector<64x1xf32> to vector<64x128xf32>
    %172 = arith.addf %168, %171 : vector<64x128xf32>
    %173 = vector.extract_strided_slice %172 {offsets = [0, 0], sizes = [32, 128], strides = [1, 1]} : vector<64x128xf32> to vector<32x128xf32>
    %174 = arith.negf %173 : vector<32x128xf32>
    %175 = math.exp %174 : vector<32x128xf32>
    %cst_71 = arith.constant 1.000000e+00 : f32
    %176 = vector.broadcast %cst_71 : f32 to vector<32x128xf32>
    %177 = arith.addf %176, %175 : vector<32x128xf32>
    %178 = arith.divf %176, %177 : vector<32x128xf32>
    %179 = vector.extract_strided_slice %172 {offsets = [32, 0], sizes = [32, 128], strides = [1, 1]} : vector<64x128xf32> to vector<32x128xf32>
    %180 = math.tanh %179 : vector<32x128xf32>
    %181 = arith.mulf %178, %180 : vector<32x128xf32>
    %c2_72 = arith.constant 2 : index
    %c0_73 = arith.constant 0 : index
    %c0_74 = arith.constant 0 : index
    %182 = vector.load %arg6[%c2_72, %c0_73, %c0_74] : memref<4x64x32xbf16, #tpu.memory_space<vmem>>, vector<1x64x32xbf16>
    %183 = vector.shape_cast %182 : vector<1x64x32xbf16> to vector<64x32xbf16>
    %184 = arith.truncf %181 : vector<32x128xf32> to vector<32x128xbf16>
    %cst_75 = arith.constant dense<0.000000e+00> : vector<64x128xf32>
    %185 = tpu.matmul %183, %184, %cst_75 {dimension_numbers = #tpu.dot_dimension_numbers<[1], [0], [0], [1], [0, 0, 1, 1], [], []>} : vector<64x32xbf16>, vector<32x128xbf16>, vector<64x128xf32> -> vector<64x128xf32>
    %c2_76 = arith.constant 2 : index
    %c0_77 = arith.constant 0 : index
    %c0_78 = arith.constant 0 : index
    %186 = vector.load %arg7[%c2_76, %c0_77, %c0_78] : memref<4x64x1xf32, #tpu.memory_space<vmem>>, vector<1x64x1xf32>
    %187 = vector.shape_cast %186 : vector<1x64x1xf32> to vector<64x1xf32>
    %188 = vector.broadcast %187 : vector<64x1xf32> to vector<64x128xf32>
    %189 = arith.addf %185, %188 : vector<64x128xf32>
    %190 = vector.extract_strided_slice %189 {offsets = [0, 0], sizes = [32, 128], strides = [1, 1]} : vector<64x128xf32> to vector<32x128xf32>
    %191 = arith.addf %151, %190 : vector<32x128xf32>
    %cst_79 = arith.constant 0.707106769 : f32
    %192 = vector.broadcast %cst_79 : f32 to vector<32x128xf32>
    %193 = arith.mulf %191, %192 : vector<32x128xf32>
    %194 = vector.extract_strided_slice %189 {offsets = [32, 0], sizes = [32, 128], strides = [1, 1]} : vector<64x128xf32> to vector<32x128xf32>
    %195 = arith.addf %153, %194 : vector<32x128xf32>
    %c3 = arith.constant 3 : index
    %c0_80 = arith.constant 0 : index
    %c0_81 = arith.constant 0 : index
    %196 = vector.load %arg1[%c3, %c0_80, %c0_81] : memref<4x32x1xf32, #tpu.memory_space<vmem>>, vector<1x32x1xf32>
    %197 = vector.shape_cast %196 : vector<1x32x1xf32> to vector<32x1xf32>
    %198 = vector.broadcast %197 : vector<32x1xf32> to vector<32x128xf32>
    %199 = arith.addf %193, %198 : vector<32x128xf32>
    %c2_i32_82 = arith.constant 2 : i32
    %200 = tpu.dynamic_rotate %199 by %c2_i32_82 dim 1 : vector<32x128xf32>, i32 -> vector<32x128xf32>
    %201 = vector.broadcast %37 : vector<1x128xf32> to vector<32x128xf32>
    %202 = arith.mulf %200, %201 : vector<32x128xf32>
    %c126_i32_83 = arith.constant 126 : i32
    %203 = tpu.dynamic_rotate %199 by %c126_i32_83 dim 1 : vector<32x128xf32>, i32 -> vector<32x128xf32>
    %204 = vector.broadcast %70 : vector<1x128xf32> to vector<32x128xf32>
    %205 = arith.mulf %203, %204 : vector<32x128xf32>
    %206 = tpu.concatenate %202, %199, %205 in 0 : vector<32x128xf32>, vector<32x128xf32>, vector<32x128xf32> -> vector<96x128xf32>
    %207 = arith.truncf %206 : vector<96x128xf32> to vector<96x128xbf16>
    %c3_84 = arith.constant 3 : index
    %c0_85 = arith.constant 0 : index
    %c0_86 = arith.constant 0 : index
    %208 = vector.load %arg4[%c3_84, %c0_85, %c0_86] : memref<4x64x96xbf16, #tpu.memory_space<vmem>>, vector<1x64x96xbf16>
    %209 = vector.shape_cast %208 : vector<1x64x96xbf16> to vector<64x96xbf16>
    %cst_87 = arith.constant dense<0.000000e+00> : vector<64x128xf32>
    %210 = tpu.matmul %209, %207, %cst_87 {dimension_numbers = #tpu.dot_dimension_numbers<[1], [0], [0], [1], [0, 0, 1, 1], [], []>} : vector<64x96xbf16>, vector<96x128xbf16>, vector<64x128xf32> -> vector<64x128xf32>
    %c3_88 = arith.constant 3 : index
    %c0_89 = arith.constant 0 : index
    %c0_90 = arith.constant 0 : index
    %211 = vector.load %arg5[%c3_88, %c0_89, %c0_90] : memref<4x64x1xf32, #tpu.memory_space<vmem>>, vector<1x64x1xf32>
    %212 = vector.shape_cast %211 : vector<1x64x1xf32> to vector<64x1xf32>
    %213 = vector.broadcast %212 : vector<64x1xf32> to vector<64x128xf32>
    %214 = arith.addf %210, %213 : vector<64x128xf32>
    %215 = vector.extract_strided_slice %214 {offsets = [0, 0], sizes = [32, 128], strides = [1, 1]} : vector<64x128xf32> to vector<32x128xf32>
    %216 = arith.negf %215 : vector<32x128xf32>
    %217 = math.exp %216 : vector<32x128xf32>
    %cst_91 = arith.constant 1.000000e+00 : f32
    %218 = vector.broadcast %cst_91 : f32 to vector<32x128xf32>
    %219 = arith.addf %218, %217 : vector<32x128xf32>
    %220 = arith.divf %218, %219 : vector<32x128xf32>
    %221 = vector.extract_strided_slice %214 {offsets = [32, 0], sizes = [32, 128], strides = [1, 1]} : vector<64x128xf32> to vector<32x128xf32>
    %222 = math.tanh %221 : vector<32x128xf32>
    %223 = arith.mulf %220, %222 : vector<32x128xf32>
    %c3_92 = arith.constant 3 : index
    %c0_93 = arith.constant 0 : index
    %c0_94 = arith.constant 0 : index
    %224 = vector.load %arg6[%c3_92, %c0_93, %c0_94] : memref<4x64x32xbf16, #tpu.memory_space<vmem>>, vector<1x64x32xbf16>
    %225 = vector.shape_cast %224 : vector<1x64x32xbf16> to vector<64x32xbf16>
    %226 = arith.truncf %223 : vector<32x128xf32> to vector<32x128xbf16>
    %cst_95 = arith.constant dense<0.000000e+00> : vector<64x128xf32>
    %227 = tpu.matmul %225, %226, %cst_95 {dimension_numbers = #tpu.dot_dimension_numbers<[1], [0], [0], [1], [0, 0, 1, 1], [], []>} : vector<64x32xbf16>, vector<32x128xbf16>, vector<64x128xf32> -> vector<64x128xf32>
    %c3_96 = arith.constant 3 : index
    %c0_97 = arith.constant 0 : index
    %c0_98 = arith.constant 0 : index
    %228 = vector.load %arg7[%c3_96, %c0_97, %c0_98] : memref<4x64x1xf32, #tpu.memory_space<vmem>>, vector<1x64x1xf32>
    %229 = vector.shape_cast %228 : vector<1x64x1xf32> to vector<64x1xf32>
    %230 = vector.broadcast %229 : vector<64x1xf32> to vector<64x128xf32>
    %231 = arith.addf %227, %230 : vector<64x128xf32>
    %232 = vector.extract_strided_slice %231 {offsets = [32, 0], sizes = [32, 128], strides = [1, 1]} : vector<64x128xf32> to vector<32x128xf32>
    %233 = arith.addf %195, %232 : vector<32x128xf32>
    %cst_99 = arith.constant 5.000000e-01 : f32
    %234 = vector.broadcast %cst_99 : f32 to vector<32x128xf32>
    %235 = arith.mulf %233, %234 : vector<32x128xf32>
    %c0_100 = arith.constant 0 : index
    %c0_101 = arith.constant 0 : index
    %236 = vector.load %arg8[%c0_100, %c0_101] : memref<32x32xbf16, #tpu.memory_space<vmem>>, vector<32x32xbf16>
    %237 = arith.truncf %235 : vector<32x128xf32> to vector<32x128xbf16>
    %cst_102 = arith.constant dense<0.000000e+00> : vector<32x128xf32>
    %238 = tpu.matmul %236, %237, %cst_102 {dimension_numbers = #tpu.dot_dimension_numbers<[1], [0], [0], [1], [0, 0, 1, 1], [], []>} : vector<32x32xbf16>, vector<32x128xbf16>, vector<32x128xf32> -> vector<32x128xf32>
    %c0_103 = arith.constant 0 : index
    %c0_104 = arith.constant 0 : index
    %239 = vector.load %arg9[%c0_103, %c0_104] : memref<32x1xf32, #tpu.memory_space<vmem>>, vector<32x1xf32>
    %240 = vector.broadcast %239 : vector<32x1xf32> to vector<32x128xf32>
    %241 = arith.addf %238, %240 : vector<32x128xf32>
    %cst_105 = arith.constant 0.000000e+00 : f32
    %242 = vector.broadcast %cst_105 : f32 to vector<32x128xf32>
    %243 = arith.maximumf %241, %242 : vector<32x128xf32>
    %c0_106 = arith.constant 0 : index
    %c0_107 = arith.constant 0 : index
    %244 = vector.load %arg10[%c0_106, %c0_107] : memref<32x1xf32, #tpu.memory_space<vmem>>, vector<32x1xf32>
    %245 = vector.broadcast %244 : vector<32x1xf32> to vector<32x128xf32>
    %246 = arith.mulf %243, %245 : vector<32x128xf32>
    %cst_108 = arith.constant dense<0.000000e+00> : vector<128xf32>
    %247 = vector.multi_reduction <add>, %246, %cst_108 [0] : vector<32x128xf32> to vector<128xf32>
    %248 = vector.shape_cast %247 : vector<128xf32> to vector<1x128xf32>
    %c0_109 = arith.constant 0 : index
    %c0_110 = arith.constant 0 : index
    %249 = vector.load %arg11[%c0_109, %c0_110] : memref<1x1xf32, #tpu.memory_space<vmem>>, vector<1x1xf32>
    %250 = vector.broadcast %249 : vector<1x1xf32> to vector<1x128xf32>
    %251 = arith.addf %248, %250 : vector<1x128xf32>
    %c0_111 = arith.constant 0 : index
    %c0_112 = arith.constant 0 : index
    %252 = vector.load %arg12[%c0_111, %c0_112] : memref<1x128xf32, #tpu.memory_space<vmem>>, vector<1x128xf32>
    tpu.vector_store %arg12[%c0_111, %c0_112], %251 {strides = array<i32>} : memref<1x128xf32, #tpu.memory_space<vmem>>, vector<1x128xf32>,
    return
  }
}

</mosaic_0001>

<bundles_post_ra>
// kernel: tpu_custom_call.1
= control target key start
LH: loop header
LB: loop body
LE: loop exit
PB: predicated region body
PF: predicated region fallthrough
CT: control target
= control target key end

     0   :  { %s3357_s0 = inlined_call_operand.vmem [shape: f32[1,128], index: 0, kind: input, shape index: {}]   ;;  %s3358_s1 = inlined_call_operand.vmem [shape: f32[4,32,1], index: 1, kind: input, shape index: {}]   ;;  %s3359_s2 = inlined_call_operand.vmem [shape: f32[32,1], index: 2, kind: input, shape index: {}]   ;;  %s3360_s3 = inlined_call_operand.vmem [shape: f32[32,1], index: 3, kind: input, shape index: {}]   ;;  %s3361_s4 = inlined_call_operand.vmem [shape: bf16[4,64,96], index: 4, kind: input, shape index: {}]   ;;  %s3362_s5 = inlined_call_operand.vmem [shape: f32[4,64,1], index: 5, kind: input, shape index: {}]   ;;  %s3363_s6 = inlined_call_operand.vmem [shape: bf16[4,64,32], index: 6, kind: input, shape index: {}]   ;;  %s3364_s7 = inlined_call_operand.vmem [shape: f32[4,64,1], index: 7, kind: input, shape index: {}]   ;;  %s3365_s8 = inlined_call_operand.vmem [shape: bf16[32,32], index: 8, kind: input, shape index: {}]   ;;  %s3366_s9 = inlined_call_operand.vmem [shape: f32[32,1], index: 9, kind: input, shape index: {}]   ;;  %s3367_s10 = inlined_call_operand.vmem [shape: f32[32,1], index: 10, kind: input, shape index: {}]   ;;  %s3368_s11 = inlined_call_operand.<no memory space> [shape: f32[1,1], index: 11, kind: input, shape index: {}]   ;;  %s3369_s12 = inlined_call_operand.hbm [shape: f32[1,128], index: 12, kind: output, shape index: {}]  }
   0x1   :  { %v17_v0 = vstv %s3368_s11 }
   0x2   :  { %18 = vst [vmem:[#allocation2] sm:$0x1] %v17_v0 }
   0x3   :  { %v79_v1 = vld [vmem:[%s3360_s3 + $0x10] sm:$0xff]  ;;  %v2306_v3 = vmov 0   ;;  %v46_v4 = vld [vmem:[%s3359_s2] sm:$0xff] }
   0x4   :  { %v48_v2 = vld [vmem:[%s3359_s2 + $0x10] sm:$0xff]  ;;  %2181 = vset.pattern.permute.xlu1 %v2306_v3  ;;  %2180 = vset.pattern.permute.xlu0 %v2306_v3 }
   0x5   :  { %93 = vperm.xlu1 %2181, %v79_v1   ;;  %62 = vperm.xlu0 %2180, %v48_v2  }
   0x6   :  { %2182 = vset.pattern.permute.xlu2 %v2306_v3 }
   0x7   :  { %52 = vperm.xlu2 %2182, %v46_v4  }
   0x8   :  { %19 = vsyncpa [#allocation4], 0  ;;  %v80_v5 = vld [vmem:[%s3360_s3 + $0x18] sm:$0xff]  ;;  %v47_v7 = vld [vmem:[%s3359_s2 + $0x8] sm:$0xff]  ;;  %s2307_s28 = smov 127   ;;  %v109_v61 = vlaneseq  ;;  %v2309_v2 = vmov 0.0  }
   0x9   :  { %v49_v6 = vld [vmem:[%s3359_s2 + $0x18] sm:$0xff]  ;;  %v78_v8 = vld [vmem:[%s3360_s3 + $0x8] sm:$0xff]  ;;  %v77_v9 = vld [vmem:[%s3360_s3] sm:$0xff]  ;;  %vm281_vm2 = vcmask 785408   ;;  %s2310_s14 = smov 126   ;;  %s2311_s15 = smov 2  }
   0xa   :  { %v149_v10 = vld [vmem:[%s3358_s1 + $0x10] sm:$0xff]  ;;  %v147_v11 = vld [vmem:[%s3358_s1] sm:$0xff]  ;;  %v150_v12 = vld [vmem:[%s3358_s1 + $0x18] sm:$0xff]  ;;  %v110_v62 = vand.u32 127, %v109_v61 }
   0xb   :  { %v148_v13 = vld [vmem:[%s3358_s1 + $0x8] sm:$0xff]  ;;  %v2183_v16 = vld [vmem:[%s3357_s0] ss:$0 sm:$0xff]  ;;  %s2308_s0 = smov 1   ;;  %v216_v45 = vld [vmem:[%s3362_s5 + $0x18] sm:$0xff] }
   0xc   :  { %v215_v46 = vld [vmem:[%s3362_s5 + $0x10] sm:$0xff]  ;;  %v213_v48 = vld [vmem:[%s3362_s5] sm:$0xff]  ;;  %v214_v49 = vld [vmem:[%s3362_s5 + $0x8] sm:$0xff]  ;;  %v2516_v63 = vand.u32 63, %v110_v62 }
   0xd   :  { %98 = vperm.xlu1 %2181, %v80_v5   ;;  %67 = vperm.xlu0 %2180, %v49_v6   ;;  %v219_v47 = vld [vmem:[%s3362_s5 + $0x30] sm:$0xff]  ;;  %v218_v50 = vld [vmem:[%s3362_s5 + $0x28] sm:$0xff]  ;;  %v220_v51 = vld [vmem:[%s3362_s5 + $0x38] sm:$0xff] }
   0xe   :  { %v217_v52 = vld [vmem:[%s3362_s5 + $0x20] sm:$0xff]  ;;  %v419_v54 = vld [vmem:[%s3364_s7 + $0x10] sm:$0xff]  ;;  %v420_v55 = vld [vmem:[%s3364_s7 + $0x18] sm:$0xff]  ;;  %v135_v1 = vadd.s32 1, %v2516_v63 }
   0xf   :  { %57 = vperm.xlu2 %2182, %v47_v7   ;;  %v417_v53 = vld [vmem:[%s3364_s7] sm:$0xff]  ;;  %v1890_v56 = vld [vmem:[%s3358_s1 + $0x38] sm:$0xff]  ;;  %v418_v57 = vld [vmem:[%s3364_s7 + $0x8] sm:$0xff] }
  0x10   :  { %v1889_v58 = vld [vmem:[%s3358_s1 + $0x30] sm:$0xff]  ;;  %v1887_v59 = vld [vmem:[%s3358_s1 + $0x20] sm:$0xff]  ;;  %v1888_v60 = vld [vmem:[%s3358_s1 + $0x28] sm:$0xff]  ;;  %vm137_vm0 = vcmp.lt.s32.totalorder %v135_v1, 64 }
  0x11   :  { %v2520_v3 = vsel %vm137_vm0, 1.0, %v2309_v2 }
  0x15   :  { %88 = vperm.xlu1 %2181, %v78_v8   ;;  %83 = vperm.xlu0 %2180, %v77_v9  }
  0x17   :  { %163 = vperm.xlu2 %2182, %v149_v10  }
  0x1d   :  { %153 = vperm.xlu1 %2181, %v147_v11   ;;  %168 = vperm.xlu0 %2180, %v150_v12   ;;  %v129_v12 = vadd.s32 4294967295, %v2516_v63 }
  0x1f   :  { %158 = vperm.xlu2 %2182, %v148_v13   ;;  %vm130_vm1 = vcmp.ge.s32.totalorder %v129_v12, 0 }
  0x61   :  { %v53_v14 = vpop.permute.xlu2 %52 }
  0x62   :  { %v73_v30 = vmul.f32 %v2183_v16, %v53_v14 }
  0x69   :  { %v58_v15 = vpop.permute.xlu2 %57 }
  0x6a   :  { %v74_v26 = vmul.f32 %v2183_v16, %v58_v15  ;;  %v2528_v15 = vsel %vm130_vm1, 1.0, %v2309_v2 }
  0x71   :  { %v164_v22 = vpop.permute.xlu2 %163 }
  0x77   :  { %v94_v17 = vpop.permute.xlu1 %93  ;;  %v63_v18 = vpop.permute.xlu0 %62 }
  0x78   :  { %v75_v19 = vmul.f32 %v2183_v16, %v63_v18 }
  0x79   :  { %v159_v35 = vpop.permute.xlu2 %158 }
  0x7a   :  { %v2420_v20 = vadd.f32 %v94_v17, %v75_v19 }
  0x7c   :  { %v107_v21 = vmax.f32 %v2420_v20, 0.0 }
  0x7e   :  { %v2425_v23 = vadd.f32 %v164_v22, %v107_v21 }
  0x7f   :  { %v99_v24 = vpop.permute.xlu1 %98  ;;  %v68_v25 = vpop.permute.xlu0 %67 }
  0x80   :  { %191 = vrot.lane.b32.xlu0 %v2425_v23, %s2307_s28  ;;  %v76_v27 = vmul.f32 %v2183_v16, %v68_v25 }
  0x82   :  { %v2431_v32 = vadd.f32 %v99_v24, %v76_v27  ;;  %v2137_v27 = vld [vmem:[%s3361_s4] sm:$0xff] }
  0x84   :  { %v108_v38 = vmax.f32 %v2431_v32, 0.0  ;;  %v1902_v32 = vld [vmem:[%s3362_s5 + $0x58] sm:$0xff] }
  0x87   :  { %v89_v28 = vpop.permute.xlu1 %88  ;;  %v84_v29 = vpop.permute.xlu0 %83 }
  0x88   :  { %v2429_v31 = vadd.f32 %v89_v28, %v74_v26  ;;  %v2434_v34 = vadd.f32 %v84_v29, %v73_v30  ;;  %v2138_v28 = vld [vmem:[%s3361_s4 + $0x8] sm:$0xff]  ;;  %v2139_v29 = vld [vmem:[%s3361_s4 + $0x10] sm:$0xff]  ;;  %v2140_v30 = vld [vmem:[%s3361_s4 + $0x18] sm:$0xff] }
  0x8a   :  { %v106_v33 = vmax.f32 %v2429_v31, 0.0  ;;  %v105_v37 = vmax.f32 %v2434_v34, 0.0 }
  0x8c   :  { %v2438_v36 = vadd.f32 %v159_v35, %v106_v33 }
  0x8e   :  { %189 = vrot.lane.b32.xlu0 %v2438_v36, %s2307_s28 }
  0x8f   :  { %v154_v39 = vpop.permute.xlu1 %153  ;;  %v169_v40 = vpop.permute.xlu0 %168 }
  0x90   :  { %v2446_v41 = vadd.f32 %v154_v39, %v105_v37  ;;  %v2450_v42 = vadd.f32 %v169_v40, %v108_v38 }
  0x92   :  { %193 = vrot.lane.b32.xlu1 %v2450_v42, %s2307_s28  ;;  %187 = vrot.lane.b32.xlu2 %v2446_v41, %s2307_s28  ;;  %v202_v43 = vpack.c.bf16 %v2450_v42, %v2425_v23  ;;  %v201_v44 = vpack.c.bf16 %v2438_v36, %v2446_v41 }
  0x96   :  { %175 = vrot.lane.b32.xlu0 %v2446_v41, %s2308_s0 }
  0x9a   :  { %179 = vrot.lane.b32.xlu1 %v2425_v23, %s2308_s0  ;;  %181 = vrot.lane.b32.xlu2 %v2450_v42, %s2308_s0 }
  0x9e   :  { %238 = vperm.xlu0 %2180, %v216_v45  }
  0xa2   :  { %177 = vrot.lane.b32.xlu1 %v2438_v36, %s2308_s0  ;;  %233 = vperm.xlu2 %2182, %v215_v46  }
  0xa6   :  { %253 = vperm.xlu0 %2180, %v219_v47  }
  0xaa   :  { %223 = vperm.xlu1 %2181, %v213_v48   ;;  %228 = vperm.xlu2 %2182, %v214_v49  }
  0xae   :  { %248 = vperm.xlu0 %2180, %v218_v50  }
  0xb2   :  { %258 = vperm.xlu1 %2181, %v220_v51   ;;  %243 = vperm.xlu2 %2182, %v217_v52  }
  0xb6   :  { %427 = vperm.xlu0 %2180, %v417_v53  }
  0xba   :  { %437 = vperm.xlu1 %2181, %v419_v54   ;;  %442 = vperm.xlu2 %2182, %v420_v55  }
  0xbe   :  { %557 = vperm.xlu0 %2180, %v1890_v56  }
  0xc2   :  { %432 = vperm.xlu1 %2181, %v418_v57   ;;  %552 = vperm.xlu2 %2182, %v1889_v58  }
  0xca   :  { %542 = vperm.xlu1 %2181, %v1887_v59   ;;  %547 = vperm.xlu2 %2182, %v1888_v60  }
  0xec   :  { %v188_v8 = vpop.permute.xlu2 %187 }
  0xed   :  { %v195_v11 = vmul.f32 %v2520_v3, %v188_v8 }
  0xf2   :  { %v192_v0 = vpop.permute.xlu0 %191 }
  0xf3   :  { %v197_v6 = vmul.f32 %v2520_v3, %v192_v0 }
  0xf4   :  { %v182_v16 = vpop.permute.xlu2 %181 }
  0xf5   :  { %v186_v19 = vmul.f32 %v2528_v15, %v182_v16 }
  0xfc   :  { %v234_v36 = vpop.permute.xlu2 %233 }
 0x100   :  { %v190_v4 = vpop.permute.xlu0 %189 }
 0x101   :  { %v196_v9 = vmul.f32 %v2520_v3, %v190_v4 }
 0x103   :  { %v203_v13 = vpack.c.bf16 %v196_v9, %v195_v11 }
 0x104   :  { %v194_v5 = vpop.permute.xlu1 %193 }
 0x105   :  { %v198_v7 = vmul.f32 %v2520_v3, %v194_v5 }
 0x107   :  { %v204_v10 = vpack.c.bf16 %v198_v7, %v197_v6 }
 0x108   :  { %v176_v22 = vpop.permute.xlu0 %175 }
 0x109   :  { %296 = vmatpush.bf16.msra.mxu0 %v204_v10  ;;  %v183_v25 = vmul.f32 %v2528_v15, %v176_v22 }
 0x10c   :  { %v180_v14 = vpop.permute.xlu1 %179 }
 0x10d   :  { %297 = vmatpush.bf16.msra.mxu0 %v203_v13  ;;  %v185_v17 = vmul.f32 %v2528_v15, %v180_v14 }
 0x10f   :  { %v200_v24 = vpack.c.bf16 %v186_v19, %v185_v17 }
 0x110   :  { %v239_v49 = vpop.permute.xlu0 %238 }
 0x111   :  { %298 = vmatpush.bf16.msra.mxu0 %v202_v43  ;;  %v229_v43 = vpop.permute.xlu2 %228 }
 0x114   :  { %v178_v18 = vpop.permute.xlu1 %177 }
 0x115   :  { %299 = vmatpush.bf16.msra.mxu0 %v201_v44  ;;  %v184_v23 = vmul.f32 %v2528_v15, %v178_v18 }
 0x117   :  { %v199_v26 = vpack.c.bf16 %v184_v23, %v183_v25 }
 0x118   :  { %v254_v4 = vpop.permute.xlu0 %253 }
 0x119   :  { %300 = vmatpush.bf16.msra.mxu0 %v200_v24  ;;  %v244_v24 = vpop.permute.xlu2 %243 }
 0x11c   :  { %v224_v40 = vpop.permute.xlu1 %223 }
 0x11d   :  { %301 = vmatpush.bf16.msra.mxu0 %v199_v26 }
 0x120   :  { %1859 = vmatmul.msk.bf16.vlgmr.msra.gmra.mxu0 %vm281_vm2, %v2137_v27  ;;  %v249_v17 = vpop.permute.xlu0 %248 }
 0x124   :  { %v259_v25 = vpop.permute.xlu1 %258 }
 0x130   :  { %1860 = vmatmul.msk.bf16.gmra.mxu0 %vm281_vm2, %v2138_v28 }
 0x140   :  { %1861 = vmatmul.msk.bf16.gmra.mxu0 %vm281_vm2, %v2139_v29 }
 0x150   :  { %1862 = vmatmul.msk.bf16.gmra.mxu0 %vm281_vm2, %v2140_v30 }
 0x19d   :  { %v303_v35 = vpop.f32.mrf.mxu0 }
 0x19e   :  { %v304_v41 = vadd.f32 %v303_v35, %v224_v40 }
 0x1a0   :  { %v1863_v46 = vmul.f32 -1.442695, %v304_v41 }
 0x1a2   :  { %2184 = vpow2.f32 %v1863_v46 }
 0x1a5   :  { %v305_v39 = vpop.f32.mrf.mxu0 }
 0x1a6   :  { %v306_v45 = vadd.f32 %v305_v39, %v229_v43 }
 0x1a8   :  { %v1864_v48 = vmul.f32 -1.442695, %v306_v45  ;;  %v2185_v53 = vpop.eup %2184 }
 0x1a9   :  { %v2553_v56 = vadd.f32 1.0, %v2185_v53 }
 0x1ab   :  { %vm344_vm12 = vweird.f32 %v2553_v56 }
 0x1ad   :  { %v308_v42 = vpop.f32.mrf.mxu0 }
 0x1ae   :  { %v309_v44 = vadd.f32 %v308_v42, %v234_v36 }
 0x1b0   :  { %v1865_v47 = vmul.f32 -1.442695, %v309_v44 }
 0x1b2   :  { %2186 = vpow2.f32 %v1865_v47 }
 0x1b3   :  { %2188 = vpow2.f32 %v1864_v48 }
 0x1b5   :  { %v310_v50 = vpop.f32.mrf.mxu0 }
 0x1b6   :  { %v311_v51 = vadd.f32 %v310_v50, %v239_v49 }
 0x1b8   :  { %v1866_v52 = vmul.f32 -1.442695, %v311_v51  ;;  %v2187_v54 = vpop.eup %2186 }
 0x1b9   :  { %v2189_v55 = vpop.eup %2188  ;;  %v2555_v58 = vadd.f32 1.0, %v2187_v54  ;;  %v350_v54 = vand.u32 2147483648, %v2553_v56 }
 0x1ba   :  { %2190 = vpow2.f32 %v1866_v52  ;;  %v2557_v60 = vadd.f32 1.0, %v2189_v55  ;;  %v1941_v55 = vld [vmem:[%s3364_s7 + $0x50] sm:$0xff] }
 0x1bb   :  { %2192 = vrcp.f32 %v2553_v56  ;;  %vm374_vm6 = vweird.f32 %v2555_v58  ;;  %v380_v39 = vand.u32 2147483648, %v2555_v58  ;;  %v378_v42 = vand.u32 2147483647, %v2555_v58 }
 0x1bc   :  { %2194 = vrcp.f32 %v2555_v58  ;;  %vm359_vm11 = vweird.f32 %v2557_v60  ;;  %v365_v46 = vand.u32 2147483648, %v2557_v60  ;;  %v363_v50 = vand.u32 2147483647, %v2557_v60 }
 0x1bd   :  { %v313_v57 = vpop.f32.mrf.mxu0  ;;  %v381_v52 = vor.u32 1.1754944e-38, %v380_v39  ;;  %vm379_vm14 = vcmp.eq.f32.partialorder %v378_v42, 8.507059e+37 }
 0x1be   :  { %v314_v29 = vadd.f32 %v313_v57, %v244_v24  ;;  %vm364_vm1 = vcmp.eq.f32.partialorder %v363_v50, 8.507059e+37  ;;  %v1905_v50 = vld [vmem:[%s3362_s5 + $0x70] sm:$0xff] }
 0x1c0   :  { %v2191_v59 = vpop.eup %2190 }
 0x1c1   :  { %v2560_v61 = vadd.f32 1.0, %v2191_v59  ;;  %v2565_v0 = vpop.eup %2192 }
 0x1c2   :  { %v2567_v1 = vpop.eup %2194  ;;  %v340_v10 = vmul.f32 %v2565_v0, %v2553_v56  ;;  %vm345_vm10 = vweird.f32 %v2565_v0 }
 0x1c3   :  { %2196 = vrcp.f32 %v2560_v61  ;;  %v370_v7 = vmul.f32 %v2567_v1, %v2555_v58  ;;  %vm375_vm4 = vweird.f32 %v2567_v1  ;;  %v395_v40 = vand.u32 2147483648, %v2560_v61  ;;  %vm346_vm0 = vmor %vm344_vm12, %vm345_vm10 }
 0x1c4   :  { %2198 = vrcp.f32 %v2557_v60  ;;  %v341_v14 = vsub.f32 1.0, %v340_v10  ;;  %vm2593_vm7 = vmor %vm374_vm6, %vm375_vm4  ;;  %vm389_vm8 = vweird.f32 %v2560_v61  ;;  %v393_v43 = vand.u32 2147483647, %v2560_v61 }
 0x1c5   :  { %v315_v62 = vpop.f32.mrf.mxu0  ;;  %v371_v12 = vsub.f32 1.0, %v370_v7  ;;  %v396_v53 = vor.u32 1.1754944e-38, %v395_v40  ;;  %v348_v58 = vand.u32 2147483647, %v2553_v56  ;;  %vm485_vm4 = vcmask 261120  }
 0x1c6   :  { %v316_v19 = vadd.f32 %v315_v62, %v249_v17  ;;  %v342_v27 = vmul.f32 %v2565_v0, %v341_v14  ;;  %vm394_vm15 = vcmp.eq.f32.partialorder %v393_v43, 8.507059e+37  ;;  %v2141_v14 = vld [vmem:[%s3363_s6] sm:$0xff]  ;;  %v443_v17 = vpop.permute.xlu2 %442 }
 0x1c7   :  { %v372_v22 = vmul.f32 %v2567_v1, %v371_v12 }
 0x1c8   :  { %v343_v49 = vadd.f32 %v2565_v0, %v342_v27 }
 0x1c9   :  { %v2569_v5 = vpop.eup %2196  ;;  %v373_v35 = vadd.f32 %v2567_v1, %v372_v22 }
 0x1ca   :  { %v2571_v6 = vpop.eup %2198  ;;  %v385_v8 = vmul.f32 %v2569_v5, %v2560_v61  ;;  %vm390_vm5 = vweird.f32 %v2569_v5  ;;  %v347_v7 = vsel %vm346_vm0, %v2565_v0, %v343_v49  ;;  %v2142_v0 = vld [vmem:[%s3363_s6 + $0x8] sm:$0xff]  ;;  %v1899_v49 = vld [vmem:[%s3362_s5 + $0x40] sm:$0xff] }
 0x1cb   :  { %v355_v11 = vmul.f32 %v2571_v6, %v2557_v60  ;;  %vm360_vm3 = vweird.f32 %v2571_v6  ;;  %vm2601_vm9 = vmor %vm389_vm8, %vm390_vm5  ;;  %v377_v47 = vsel %vm2593_vm7, %v2567_v1, %v373_v35  ;;  %v366_v1 = vor.u32 1.1754944e-38, %v365_v46 }
 0x1cc   :  { %v386_v13 = vsub.f32 1.0, %v385_v8  ;;  %vm2620_vm13 = vmor %vm359_vm11, %vm360_vm3  ;;  %v382_v61 = vsel %vm379_vm14, %v381_v52, %v377_v47  ;;  %vm349_vm3 = vcmp.eq.f32.partialorder %v348_v58, 8.507059e+37  ;;  %v1906_v52 = vld [vmem:[%s3362_s5 + $0x78] sm:$0xff]  ;;  %v1969_v58 = vld [vmem:[%s3358_s1 + $0x50] sm:$0xff] }
 0x1cd   :  { %v318_v9 = vpop.f32.mrf.mxu0  ;;  %v356_v16 = vsub.f32 1.0, %v355_v11 }
 0x1ce   :  { %v319_v18 = vadd.f32 %v318_v9, %v254_v4  ;;  %v387_v23 = vmul.f32 %v2569_v5, %v386_v13  ;;  %v351_v9 = vor.u32 1.1754944e-38, %v350_v54  ;;  %v1942_v54 = vld [vmem:[%s3364_s7 + $0x58] sm:$0xff] }
 0x1cf   :  { %v357_v28 = vmul.f32 %v2571_v6, %v356_v16  ;;  %v438_v16 = vpop.permute.xlu1 %437 }
 0x1d0   :  { %2200 = vtanh.f32 %v319_v18  ;;  %v388_v36 = vadd.f32 %v2569_v5, %v387_v23  ;;  %v352_v12 = vsel %vm349_vm3, %v351_v9, %v347_v7 }
 0x1d1   :  { %2202 = vtanh.f32 %v316_v19  ;;  %v358_v44 = vadd.f32 %v2571_v6, %v357_v28  ;;  %v428_v19 = vpop.permute.xlu0 %427 }
 0x1d2   :  { %v392_v48 = vsel %vm2601_vm9, %v2569_v5, %v388_v36 }
 0x1d3   :  { %v362_v59 = vsel %vm2620_vm13, %v2571_v6, %v358_v44  ;;  %v397_v62 = vsel %vm394_vm15, %v396_v53, %v392_v48  ;;  %v1904_v53 = vld [vmem:[%s3362_s5 + $0x68] sm:$0xff] }
 0x1d4   :  { %v367_v10 = vsel %vm364_vm1, %v366_v1, %v362_v59  ;;  %v1940_v59 = vld [vmem:[%s3364_s7 + $0x48] sm:$0xff] }
 0x1d5   :  { %v320_v26 = vpop.f32.mrf.mxu0 }
 0x1d6   :  { %v321_v30 = vadd.f32 %v320_v26, %v259_v25  ;;  %v2201_v51 = vpop.eup %2200  ;;  %v553_v25 = vpop.permute.xlu2 %552 }
 0x1d7   :  { %v2203_v57 = vpop.eup %2202  ;;  %v405_v4 = vmul.f32 %v2201_v51, %v382_v61  ;;  %v433_v18 = vpop.permute.xlu1 %432  ;;  %v1903_v51 = vld [vmem:[%s3362_s5 + $0x60] sm:$0xff]  ;;  %v1968_v61 = vld [vmem:[%s3358_s1 + $0x48] sm:$0xff] }
 0x1d8   :  { %2204 = vtanh.f32 %v321_v30  ;;  %v404_v11 = vmul.f32 %v2203_v57, %v367_v10  ;;  %v1939_v57 = vld [vmem:[%s3364_s7 + $0x40] sm:$0xff] }
 0x1d9   :  { %2206 = vtanh.f32 %v314_v29  ;;  %v558_v47 = vpop.permute.xlu0 %557 }
 0x1de   :  { %v2205_v60 = vpop.eup %2204  ;;  %v548_v34 = vpop.permute.xlu2 %547 }
 0x1df   :  { %v406_v5 = vmul.f32 %v2205_v60, %v397_v62  ;;  %v2207_v8 = vpop.eup %2206  ;;  %v543_v27 = vpop.permute.xlu1 %542  ;;  %v1970_v60 = vld [vmem:[%s3358_s1 + $0x58] sm:$0xff]  ;;  %v1967_v62 = vld [vmem:[%s3358_s1 + $0x40] sm:$0xff] }
 0x1e0   :  { %v403_v6 = vmul.f32 %v2207_v8, %v352_v12 }
 0x1e1   :  { %v416_v56 = vpack.c.bf16 %v406_v5, %v405_v4  ;;  %v141_v4 = vadd.s32 2, %v2516_v63 }
 0x1e2   :  { %v415_v13 = vpack.c.bf16 %v404_v11, %v403_v6 }
 0x1e3   :  { %504 = vmatpush.bf16.msra.mxu1 %v416_v56  ;;  %2171 = vmatpush.bf16.msra.mxu3 %v416_v56  ;;  %vm143_vm5 = vcmp.lt.s32.totalorder %v141_v4, 64 }
 0x1e4   :  { %v2732_v5 = vsel %vm143_vm5, 1.0, %v2309_v2 }
 0x1e7   :  { %505 = vmatpush.bf16.msra.mxu1 %v415_v13  ;;  %2172 = vmatpush.bf16.msra.mxu3 %v415_v13  ;;  %v123_v13 = vadd.s32 4294967294, %v2516_v63 }
 0x1e9   :  { %vm124_vm6 = vcmp.ge.s32.totalorder %v123_v13, 0 }
 0x1ea   :  { %1883 = vmatmul.msk.bf16.vlgmr.msra.gmra.mxu1 %vm485_vm4, %v2141_v14 }
 0x1fa   :  { %1884 = vmatmul.msk.bf16.gmra.mxu1 %vm485_vm4, %v2142_v0 }
 0x267   :  { %v507_v22 = vpop.f32.mrf.mxu1 }
 0x268   :  { %v508_v23 = vadd.f32 %v507_v22, %v428_v19 }
 0x26a   :  { %v527_v24 = vadd.f32 %v508_v23, %v105_v37 }
 0x26c   :  { %v2641_v26 = vmul.f32 0.70710677, %v527_v24 }
 0x26e   :  { %v2644_v28 = vadd.f32 %v543_v27, %v2641_v26 }
 0x26f   :  { %v509_v29 = vpop.f32.mrf.mxu1 }
 0x270   :  { %v510_v30 = vadd.f32 %v509_v29, %v433_v18  ;;  %576 = vrot.lane.b32.xlu2 %v2644_v28, %s2310_s14  ;;  %v2147_v29 = vld [vmem:[%s3361_s4 + $0x30] sm:$0xff] }
 0x272   :  { %v528_v35 = vadd.f32 %v510_v30, %v106_v33  ;;  %v2148_v30 = vld [vmem:[%s3361_s4 + $0x38] sm:$0xff] }
 0x274   :  { %v2650_v36 = vmul.f32 0.70710677, %v528_v35 }
 0x276   :  { %v2653_v37 = vadd.f32 %v548_v34, %v2650_v36 }
 0x277   :  { %v512_v39 = vpop.f32.mrf.mxu1 }
 0x278   :  { %v513_v40 = vadd.f32 %v512_v39, %v438_v16  ;;  %v590_v41 = vpack.c.bf16 %v2653_v37, %v2644_v28  ;;  %v2740_v16 = vsel %vm124_vm6, 1.0, %v2309_v2  ;;  %v2145_v2 = vld [vmem:[%s3361_s4 + $0x20] sm:$0xff] }
 0x27a   :  { %v529_v42 = vadd.f32 %v513_v40, %v107_v21  ;;  %v1901_v21 = vld [vmem:[%s3362_s5 + $0x50] sm:$0xff] }
 0x27c   :  { %v2659_v43 = vmul.f32 0.70710677, %v529_v42 }
 0x27e   :  { %v2662_v44 = vadd.f32 %v553_v25, %v2659_v43 }
 0x27f   :  { %v514_v31 = vpop.f32.mrf.mxu1 }
 0x280   :  { %v515_v33 = vadd.f32 %v514_v31, %v443_v17  ;;  %580 = vrot.lane.b32.xlu0 %v2662_v44, %s2310_s14 }
 0x282   :  { %v530_v45 = vadd.f32 %v515_v33, %v108_v38  ;;  %v1900_v38 = vld [vmem:[%s3362_s5 + $0x48] sm:$0xff] }
 0x284   :  { %v2668_v46 = vmul.f32 0.70710677, %v530_v45  ;;  %v2144_v45 = vld [vmem:[%s3363_s6 + $0x18] sm:$0xff] }
 0x285   :  { %1886 = vmatmul.msk.bf16.vlgmr.msra.gmra.mxu3 %vm485_vm4, %v2144_v45 }
 0x286   :  { %v563_v48 = vadd.f32 %v558_v47, %v2668_v46 }
 0x288   :  { %582 = vrot.lane.b32.xlu1 %v563_v48, %s2310_s14  ;;  %578 = vrot.lane.b32.xlu0 %v2653_v37, %s2310_s14  ;;  %v591_v20 = vpack.c.bf16 %v563_v48, %v2662_v44 }
 0x289   :  { %570 = vrot.lane.b32.xlu2 %v563_v48, %s2311_s15 }
 0x290   :  { %568 = vrot.lane.b32.xlu1 %v2662_v44, %s2311_s15  ;;  %564 = vrot.lane.b32.xlu0 %v2644_v28, %s2311_s15  ;;  %v2146_v28 = vld [vmem:[%s3361_s4 + $0x28] sm:$0xff] }
 0x291   :  { %624 = vperm.xlu2 %2182, %v1901_v21  }
 0x298   :  { %566 = vrot.lane.b32.xlu1 %v2653_v37, %s2311_s15  ;;  %629 = vperm.xlu0 %2180, %v1902_v32  }
 0x299   :  { %619 = vperm.xlu2 %2182, %v1900_v38  }
 0x2a0   :  { %614 = vperm.xlu1 %2181, %v1899_v49   ;;  %644 = vperm.xlu0 %2180, %v1905_v50  }
 0x2a1   :  { %634 = vperm.xlu2 %2182, %v1903_v51  }
 0x2a8   :  { %649 = vperm.xlu1 %2181, %v1906_v52   ;;  %639 = vperm.xlu0 %2180, %v1904_v53  }
 0x2a9   :  { %834 = vperm.xlu2 %2182, %v1942_v54  }
 0x2b0   :  { %829 = vperm.xlu1 %2181, %v1941_v55   ;;  %819 = vperm.xlu0 %2180, %v1939_v57  }
 0x2b1   :  { %947 = vperm.xlu2 %2182, %v1969_v58  }
 0x2b8   :  { %824 = vperm.xlu1 %2181, %v1940_v59   ;;  %952 = vperm.xlu0 %2180, %v1970_v60  }
 0x2b9   :  { %942 = vperm.xlu2 %2182, %v1968_v61  }
 0x2c0   :  { %937 = vperm.xlu1 %2181, %v1967_v62  }
 0x2ca   :  { %v577_v56 = vpop.permute.xlu2 %576 }
 0x2cb   :  { %v584_v6 = vmul.f32 %v2732_v5, %v577_v56 }
 0x2e3   :  { %v571_v17 = vpop.permute.xlu2 %570 }
 0x2e4   :  { %v575_v22 = vmul.f32 %v2740_v16, %v571_v17 }
 0x2eb   :  { %v625_v34 = vpop.permute.xlu2 %624 }
 0x2f2   :  { %v581_v1 = vpop.permute.xlu0 %580 }
 0x2f3   :  { %v586_v9 = vmul.f32 %v2732_v5, %v581_v1  ;;  %v620_v42 = vpop.permute.xlu2 %619 }
 0x2fa   :  { %v583_v7 = vpop.permute.xlu1 %582  ;;  %v579_v8 = vpop.permute.xlu0 %578 }
 0x2fb   :  { %v587_v10 = vmul.f32 %v2732_v5, %v583_v7  ;;  %v585_v11 = vmul.f32 %v2732_v5, %v579_v8 }
 0x2fd   :  { %v593_v12 = vpack.c.bf16 %v587_v10, %v586_v9  ;;  %v592_v14 = vpack.c.bf16 %v585_v11, %v584_v6 }
 0x2ff   :  { %686 = vmatpush.bf16.msra.mxu2 %v593_v12 }
 0x302   :  { %v569_v0 = vpop.permute.xlu1 %568  ;;  %v565_v23 = vpop.permute.xlu0 %564 }
 0x303   :  { %687 = vmatpush.bf16.msra.mxu2 %v592_v14  ;;  %v574_v18 = vmul.f32 %v2740_v16, %v569_v0  ;;  %v572_v25 = vmul.f32 %v2740_v16, %v565_v23 }
 0x305   :  { %v589_v24 = vpack.c.bf16 %v575_v22, %v574_v18  ;;  %v635_v22 = vpop.permute.xlu2 %634 }
 0x307   :  { %688 = vmatpush.bf16.msra.mxu2 %v591_v20 }
 0x30a   :  { %v567_v19 = vpop.permute.xlu1 %566  ;;  %v630_v20 = vpop.permute.xlu0 %629 }
 0x30b   :  { %689 = vmatpush.bf16.msra.mxu2 %v590_v41  ;;  %v573_v63 = vmul.f32 %v2740_v16, %v567_v19 }
 0x30d   :  { %v588_v27 = vpack.c.bf16 %v573_v63, %v572_v25 }
 0x30f   :  { %690 = vmatpush.bf16.msra.mxu2 %v589_v24 }
 0x312   :  { %v615_v39 = vpop.permute.xlu1 %614  ;;  %v645_v62 = vpop.permute.xlu0 %644 }
 0x313   :  { %691 = vmatpush.bf16.msra.mxu2 %v588_v27 }
 0x316   :  { %1923 = vmatmul.msk.bf16.vlgmr.msra.gmra.mxu2 %vm281_vm2, %v2145_v2 }
 0x31a   :  { %v640_v14 = vpop.permute.xlu0 %639  ;;  %v650_v23 = vpop.permute.xlu1 %649 }
 0x326   :  { %1924 = vmatmul.msk.bf16.gmra.mxu2 %vm281_vm2, %v2146_v28 }
 0x336   :  { %1925 = vmatmul.msk.bf16.gmra.mxu2 %vm281_vm2, %v2147_v29 }
 0x346   :  { %1926 = vmatmul.msk.bf16.gmra.mxu2 %vm281_vm2, %v2148_v30 }
 0x399   :  { %v693_v35 = vpop.f32.mrf.mxu2 }
 0x39a   :  { %v694_v40 = vadd.f32 %v693_v35, %v615_v39 }
 0x39c   :  { %v1927_v33 = vmul.f32 -1.442695, %v694_v40 }
 0x39e   :  { %2208 = vpow2.f32 %v1927_v33 }
 0x3a1   :  { %v695_v37 = vpop.f32.mrf.mxu2 }
 0x3a2   :  { %v696_v31 = vadd.f32 %v695_v37, %v620_v42 }
 0x3a4   :  { %v1928_v48 = vmul.f32 -1.442695, %v696_v31  ;;  %v2209_v49 = vpop.eup %2208 }
 0x3a5   :  { %v2769_v52 = vadd.f32 1.0, %v2209_v49 }
 0x3a7   :  { %vm734_vm0 = vweird.f32 %v2769_v52  ;;  %v738_v49 = vand.u32 2147483647, %v2769_v52 }
 0x3a9   :  { %v698_v41 = vpop.f32.mrf.mxu2 }
 0x3aa   :  { %v699_v44 = vadd.f32 %v698_v41, %v625_v34 }
 0x3ac   :  { %v1929_v47 = vmul.f32 -1.442695, %v699_v44 }
 0x3ae   :  { %2210 = vpow2.f32 %v1929_v47 }
 0x3af   :  { %2212 = vpow2.f32 %v1928_v48 }
 0x3b1   :  { %v700_v21 = vpop.f32.mrf.mxu2 }
 0x3b2   :  { %v701_v32 = vadd.f32 %v700_v21, %v630_v20  ;;  %v740_v21 = vand.u32 2147483648, %v2769_v52 }
 0x3b4   :  { %v1930_v38 = vmul.f32 -1.442695, %v701_v32  ;;  %v2211_v50 = vpop.eup %2210  ;;  %v1984_v32 = vld [vmem:[%s3362_s5 + $0xa8] sm:$0xff] }
 0x3b5   :  { %v2213_v51 = vpop.eup %2212  ;;  %v2771_v54 = vadd.f32 1.0, %v2211_v50 }
 0x3b6   :  { %2214 = vpow2.f32 %v1930_v38  ;;  %v2773_v57 = vadd.f32 1.0, %v2213_v51 }
 0x3b7   :  { %2216 = vrcp.f32 %v2769_v52  ;;  %vm764_vm10 = vweird.f32 %v2771_v54  ;;  %v770_v30 = vand.u32 2147483648, %v2771_v54  ;;  %v768_v37 = vand.u32 2147483647, %v2771_v54 }
 0x3b8   :  { %2218 = vrcp.f32 %v2771_v54  ;;  %vm749_vm15 = vweird.f32 %v2773_v57  ;;  %v755_v42 = vand.u32 2147483648, %v2773_v57  ;;  %v753_v45 = vand.u32 2147483647, %v2773_v57 }
 0x3b9   :  { %v703_v53 = vpop.f32.mrf.mxu2  ;;  %v771_v48 = vor.u32 1.1754944e-38, %v770_v30  ;;  %vm769_vm3 = vcmp.eq.f32.partialorder %v768_v37, 8.507059e+37 }
 0x3ba   :  { %v704_v27 = vadd.f32 %v703_v53, %v635_v22 }
 0x3bc   :  { %v2215_v55 = vpop.eup %2214 }
 0x3bd   :  { %v2776_v58 = vadd.f32 1.0, %v2215_v55  ;;  %v2781_v60 = vpop.eup %2216  ;;  %v756_v55 = vor.u32 1.1754944e-38, %v755_v42 }
 0x3be   :  { %v2783_v61 = vpop.eup %2218  ;;  %v730_v10 = vmul.f32 %v2781_v60, %v2769_v52  ;;  %vm735_vm14 = vweird.f32 %v2781_v60 }
 0x3bf   :  { %2220 = vrcp.f32 %v2776_v58  ;;  %v760_v7 = vmul.f32 %v2783_v61, %v2771_v54  ;;  %vm765_vm8 = vweird.f32 %v2783_v61  ;;  %v785_v35 = vand.u32 2147483648, %v2776_v58  ;;  %vm736_vm6 = vmor %vm734_vm0, %vm735_vm14 }
 0x3c0   :  { %2222 = vrcp.f32 %v2773_v57  ;;  %v731_v6 = vsub.f32 1.0, %v730_v10  ;;  %vm2809_vm11 = vmor %vm764_vm10, %vm765_vm8  ;;  %vm779_vm12 = vweird.f32 %v2776_v58  ;;  %v783_v39 = vand.u32 2147483647, %v2776_v58  ;;  %v2149_v10 = vld [vmem:[%s3363_s6 + $0x20] sm:$0xff] }
 0x3c1   :  { %v705_v59 = vpop.f32.mrf.mxu2  ;;  %v761_v11 = vsub.f32 1.0, %v760_v7  ;;  %v786_v20 = vor.u32 1.1754944e-38, %v785_v35  ;;  %vm739_vm8 = vcmp.eq.f32.partialorder %v738_v49, 8.507059e+37  ;;  %v2021_v49 = vld [vmem:[%s3364_s7 + $0x90] sm:$0xff] }
 0x3c2   :  { %v706_v17 = vadd.f32 %v705_v59, %v640_v14  ;;  %v732_v24 = vmul.f32 %v2781_v60, %v731_v6  ;;  %vm784_vm5 = vcmp.eq.f32.partialorder %v783_v39, 8.507059e+37  ;;  %v835_v6 = vpop.permute.xlu2 %834  ;;  %v820_v14 = vpop.permute.xlu0 %819 }
 0x3c3   :  { %v762_v18 = vmul.f32 %v2783_v61, %v761_v11  ;;  %v830_v11 = vpop.permute.xlu1 %829 }
 0x3c4   :  { %v733_v33 = vadd.f32 %v2781_v60, %v732_v24 }
 0x3c5   :  { %v2785_v1 = vpop.eup %2220  ;;  %v763_v28 = vadd.f32 %v2783_v61, %v762_v18 }
 0x3c6   :  { %v2787_v4 = vpop.eup %2222  ;;  %v775_v8 = vmul.f32 %v2785_v1, %v2776_v58  ;;  %vm780_vm9 = vweird.f32 %v2785_v1  ;;  %v737_v59 = vsel %vm736_vm6, %v2781_v60, %v733_v33  ;;  %v2150_v60 = vld [vmem:[%s3363_s6 + $0x28] sm:$0xff]  ;;  %v1981_v33 = vld [vmem:[%s3362_s5 + $0x90] sm:$0xff] }
 0x3c7   :  { %v745_v56 = vmul.f32 %v2787_v4, %v2773_v57  ;;  %vm750_vm7 = vweird.f32 %v2787_v4  ;;  %vm2817_vm13 = vmor %vm779_vm12, %vm780_vm9  ;;  %v767_v44 = vsel %vm2809_vm11, %v2783_v61, %v763_v28 }
 0x3c8   :  { %v776_v12 = vsub.f32 1.0, %v775_v8  ;;  %vm2836_vm1 = vmor %vm749_vm15, %vm750_vm7  ;;  %v772_v53 = vsel %vm769_vm3, %v771_v48, %v767_v44  ;;  %vm754_vm7 = vcmp.eq.f32.partialorder %v753_v45, 8.507059e+37  ;;  %v1980_v45 = vld [vmem:[%s3362_s5 + $0x88] sm:$0xff]  ;;  %v1985_v48 = vld [vmem:[%s3362_s5 + $0xb0] sm:$0xff] }
 0x3c9   :  { %v708_v9 = vpop.f32.mrf.mxu2  ;;  %v746_v13 = vsub.f32 1.0, %v745_v56  ;;  %v2855_v56 = vpop.f32.mrf.mxu3 }
 0x3ca   :  { %v709_v0 = vadd.f32 %v708_v9, %v645_v62  ;;  %v777_v19 = vmul.f32 %v2785_v1, %v776_v12  ;;  %v741_v62 = vor.u32 1.1754944e-38, %v740_v21  ;;  %v953_v44 = vpop.permute.xlu0 %952  ;;  %v1986_v21 = vld [vmem:[%s3362_s5 + $0xb8] sm:$0xff] }
 0x3cb   :  { %v747_v25 = vmul.f32 %v2787_v4, %v746_v13  ;;  %v825_v13 = vpop.permute.xlu1 %824 }
 0x3cc   :  { %2224 = vtanh.f32 %v709_v0  ;;  %v778_v29 = vadd.f32 %v2785_v1, %v777_v19  ;;  %v742_v8 = vsel %vm739_vm8, %v741_v62, %v737_v59  ;;  %v948_v19 = vpop.permute.xlu2 %947 }
 0x3cd   :  { %2226 = vtanh.f32 %v706_v17  ;;  %v748_v40 = vadd.f32 %v2787_v4, %v747_v25 }
 0x3ce   :  { %v782_v31 = vsel %vm2817_vm13, %v2785_v1, %v778_v29 }
 0x3cf   :  { %v752_v50 = vsel %vm2836_vm1, %v2787_v4, %v748_v40  ;;  %v787_v54 = vsel %vm784_vm5, %v786_v20, %v782_v31  ;;  %v1983_v20 = vld [vmem:[%s3362_s5 + $0xa0] sm:$0xff] }
 0x3d0   :  { %v757_v1 = vsel %vm754_vm7, %v756_v55, %v752_v50  ;;  %v2019_v50 = vld [vmem:[%s3364_s7 + $0x80] sm:$0xff]  ;;  %v2048_v55 = vld [vmem:[%s3358_s1 + $0x68] sm:$0xff] }
 0x3d1   :  { %v710_v63 = vpop.f32.mrf.mxu2  ;;  %v2857_v12 = vpop.f32.mrf.mxu3 }
 0x3d2   :  { %v711_v2 = vadd.f32 %v710_v63, %v650_v23  ;;  %v2225_v47 = vpop.eup %2224 }
 0x3d3   :  { %v2227_v38 = vpop.eup %2226  ;;  %v795_v57 = vmul.f32 %v2225_v47, %v772_v53  ;;  %v938_v23 = vpop.permute.xlu1 %937  ;;  %v1979_v47 = vld [vmem:[%s3362_s5 + $0x80] sm:$0xff]  ;;  %v2020_v53 = vld [vmem:[%s3364_s7 + $0x88] sm:$0xff] }
 0x3d4   :  { %2228 = vtanh.f32 %v711_v2  ;;  %v794_v7 = vmul.f32 %v2227_v38, %v757_v1  ;;  %v943_v28 = vpop.permute.xlu2 %942  ;;  %v2022_v38 = vld [vmem:[%s3364_s7 + $0x98] sm:$0xff] }
 0x3d5   :  { %2230 = vtanh.f32 %v704_v27 }
 0x3da   :  { %v2229_v51 = vpop.eup %2228 }
 0x3db   :  { %v796_v58 = vmul.f32 %v2229_v51, %v787_v54  ;;  %v2231_v61 = vpop.eup %2230  ;;  %v2049_v51 = vld [vmem:[%s3358_s1 + $0x70] sm:$0xff]  ;;  %v2050_v54 = vld [vmem:[%s3358_s1 + $0x78] sm:$0xff] }
 0x3dc   :  { %v793_v4 = vmul.f32 %v2231_v61, %v742_v8 }
 0x3dd   :  { %v807_v52 = vpack.c.bf16 %v796_v58, %v795_v57  ;;  %v2047_v57 = vld [vmem:[%s3358_s1 + $0x60] sm:$0xff]  ;;  %v2143_v58 = vld [vmem:[%s3363_s6 + $0x10] sm:$0xff] }
 0x3de   :  { %v806_v9 = vpack.c.bf16 %v794_v7, %v793_v4  ;;  %1885 = vmatmul.msk.bf16.gmra.mxu1 %vm485_vm4, %v2143_v58 }
 0x3df   :  { %895 = vmatpush.bf16.msrb.mxu3 %v807_v52 }
 0x3e3   :  { %896 = vmatpush.bf16.msrb.mxu3 %v806_v9 }
 0x3e6   :  { %1963 = vmatmul.msk.bf16.vlgmr.msrb.gmra.mxu3 %vm485_vm4, %v2149_v10 }
 0x3f6   :  { %1964 = vmatmul.msk.bf16.gmra.mxu3 %vm485_vm4, %v2150_v60 }
 0x469   :  { %v898_v0 = vpop.f32.mrf.mxu3 }
 0x46a   :  { %v899_v17 = vadd.f32 %v898_v0, %v820_v14 }
 0x46c   :  { %v918_v18 = vadd.f32 %v899_v17, %v2641_v26 }
 0x46e   :  { %v2860_v22 = vmul.f32 0.70710677, %v918_v18 }
 0x470   :  { %v2863_v63 = vadd.f32 %v938_v23, %v2860_v22  ;;  %v2153_v23 = vld [vmem:[%s3361_s4 + $0x40] sm:$0xff] }
 0x471   :  { %v900_v24 = vpop.f32.mrf.mxu3 }
 0x472   :  { %v901_v25 = vadd.f32 %v900_v24, %v825_v13  ;;  %971 = vrot.lane.b32.xlu2 %v2863_v63, %s2307_s28  ;;  %v2155_v24 = vld [vmem:[%s3361_s4 + $0x50] sm:$0xff] }
 0x474   :  { %v919_v27 = vadd.f32 %v901_v25, %v2650_v36  ;;  %v2972_v25 = vpop.f32.mrf.mxu1 }
 0x476   :  { %v2868_v2 = vmul.f32 0.70710677, %v919_v27 }
 0x478   :  { %v2871_v29 = vadd.f32 %v943_v28, %v2868_v2 }
 0x479   :  { %v903_v26 = vpop.f32.mrf.mxu3 }
 0x47a   :  { %v904_v30 = vadd.f32 %v903_v26, %v830_v11  ;;  %v985_v35 = vpack.c.bf16 %v2871_v29, %v2863_v63 }
 0x47c   :  { %v920_v34 = vadd.f32 %v904_v30, %v2659_v43  ;;  %v2974_v27 = vpop.f32.mrf.mxu1 }
 0x47e   :  { %v2876_v37 = vmul.f32 0.70710677, %v920_v34 }
 0x480   :  { %v957_v39 = vadd.f32 %v948_v19, %v2876_v37 }
 0x481   :  { %v905_v40 = vpop.f32.mrf.mxu3 }
 0x482   :  { %v906_v41 = vadd.f32 %v905_v40, %v835_v6  ;;  %975 = vrot.lane.b32.xlu0 %v957_v39, %s2307_s28 }
 0x484   :  { %v921_v36 = vadd.f32 %v906_v41, %v2668_v46  ;;  %v1982_v46 = vld [vmem:[%s3362_s5 + $0x98] sm:$0xff] }
 0x486   :  { %v2881_v42 = vmul.f32 0.70710677, %v921_v36 }
 0x488   :  { %v958_v31 = vadd.f32 %v953_v44, %v2881_v42 }
 0x48a   :  { %977 = vrot.lane.b32.xlu1 %v958_v31, %s2307_s28  ;;  %973 = vrot.lane.b32.xlu0 %v2871_v29, %s2307_s28  ;;  %v986_v43 = vpack.c.bf16 %v958_v31, %v957_v39 }
 0x48b   :  { %965 = vrot.lane.b32.xlu2 %v958_v31, %s2308_s0 }
 0x492   :  { %963 = vrot.lane.b32.xlu1 %v957_v39, %s2308_s0  ;;  %959 = vrot.lane.b32.xlu0 %v2863_v63, %s2308_s0  ;;  %v2154_v63 = vld [vmem:[%s3361_s4 + $0x48] sm:$0xff] }
 0x493   :  { %1019 = vperm.xlu2 %2182, %v1981_v33  }
 0x49a   :  { %961 = vrot.lane.b32.xlu1 %v2871_v29, %s2308_s0  ;;  %1024 = vperm.xlu0 %2180, %v1982_v46   ;;  %v2151_v29 = vld [vmem:[%s3363_s6 + $0x30] sm:$0xff] }
 0x49b   :  { %1014 = vperm.xlu2 %2182, %v1980_v45   ;;  %1965 = vmatmul.msk.bf16.gmra.mxu3 %vm485_vm4, %v2151_v29 }
 0x4a2   :  { %1009 = vperm.xlu1 %2181, %v1979_v47   ;;  %1039 = vperm.xlu0 %2180, %v1985_v48  }
 0x4a3   :  { %1029 = vperm.xlu2 %2182, %v1983_v20  }
 0x4aa   :  { %1044 = vperm.xlu1 %2181, %v1986_v21   ;;  %1034 = vperm.xlu0 %2180, %v1984_v32  }
 0x4ab   :  { %1229 = vperm.xlu2 %2182, %v2022_v38  }
 0x4b2   :  { %1224 = vperm.xlu1 %2181, %v2021_v49   ;;  %1214 = vperm.xlu0 %2180, %v2019_v50  }
 0x4b3   :  { %1342 = vperm.xlu2 %2182, %v2049_v51  }
 0x4ba   :  { %1219 = vperm.xlu1 %2181, %v2020_v53   ;;  %1347 = vperm.xlu0 %2180, %v2050_v54  }
 0x4bb   :  { %1337 = vperm.xlu2 %2182, %v2048_v55  }
 0x4c2   :  { %1332 = vperm.xlu1 %2181, %v2047_v57  }
 0x4cc   :  { %v972_v7 = vpop.permute.xlu2 %971 }
 0x4cd   :  { %v979_v9 = vmul.f32 %v2520_v3, %v972_v7 }
 0x4e5   :  { %v966_v11 = vpop.permute.xlu2 %965 }
 0x4e6   :  { %v970_v14 = vmul.f32 %v2528_v15, %v966_v11 }
 0x4ed   :  { %v1020_v26 = vpop.permute.xlu2 %1019 }
 0x4f4   :  { %v976_v59 = vpop.permute.xlu0 %975 }
 0x4f5   :  { %v981_v1 = vmul.f32 %v2520_v3, %v976_v59  ;;  %v1015_v40 = vpop.permute.xlu2 %1014 }
 0x4fc   :  { %v978_v61 = vpop.permute.xlu1 %977  ;;  %v974_v62 = vpop.permute.xlu0 %973 }
 0x4fd   :  { %v982_v52 = vmul.f32 %v2520_v3, %v978_v61  ;;  %v980_v8 = vmul.f32 %v2520_v3, %v974_v62 }
 0x4ff   :  { %v988_v4 = vpack.c.bf16 %v982_v52, %v981_v1  ;;  %v987_v10 = vpack.c.bf16 %v980_v8, %v979_v9 }
 0x501   :  { %1081 = vmatpush.bf16.msrb.mxu1 %v988_v4 }
 0x504   :  { %v964_v60 = vpop.permute.xlu1 %963  ;;  %v960_v0 = vpop.permute.xlu0 %959 }
 0x505   :  { %1082 = vmatpush.bf16.msrb.mxu1 %v987_v10  ;;  %v969_v6 = vmul.f32 %v2528_v15, %v964_v60  ;;  %v967_v3 = vmul.f32 %v2528_v15, %v960_v0 }
 0x507   :  { %v984_v18 = vpack.c.bf16 %v970_v14, %v969_v6 }
 0x509   :  { %1083 = vmatpush.bf16.msrb.mxu1 %v986_v43  ;;  %v2152_v43 = vld [vmem:[%s3363_s6 + $0x38] sm:$0xff] }
 0x50a   :  { %1966 = vmatmul.msk.bf16.gmra.mxu3 %vm485_vm4, %v2152_v43 }
 0x50c   :  { %v962_v13 = vpop.permute.xlu1 %961  ;;  %v1025_v46 = vpop.permute.xlu0 %1024 }
 0x50d   :  { %1084 = vmatpush.bf16.msrb.mxu1 %v985_v35  ;;  %v968_v17 = vmul.f32 %v2528_v15, %v962_v13  ;;  %v2156_v15 = vld [vmem:[%s3361_s4 + $0x58] sm:$0xff] }
 0x50f   :  { %v983_v19 = vpack.c.bf16 %v968_v17, %v967_v3 }
 0x511   :  { %1085 = vmatpush.bf16.msrb.mxu1 %v984_v18  ;;  %v1030_v18 = vpop.permute.xlu2 %1029 }
 0x514   :  { %v1010_v35 = vpop.permute.xlu1 %1009  ;;  %v1040_v59 = vpop.permute.xlu0 %1039 }
 0x515   :  { %1086 = vmatpush.bf16.msrb.mxu1 %v983_v19 }
 0x518   :  { %2003 = vmatmul.msk.bf16.vlgmr.msrb.gmra.mxu1 %vm281_vm2, %v2153_v23 }
 0x51c   :  { %v1035_v6 = vpop.permute.xlu0 %1034  ;;  %v1045_v3 = vpop.permute.xlu1 %1044 }
 0x528   :  { %2004 = vmatmul.msk.bf16.gmra.mxu1 %vm281_vm2, %v2154_v63 }
 0x538   :  { %2005 = vmatmul.msk.bf16.gmra.mxu1 %vm281_vm2, %v2155_v24 }
 0x548   :  { %2006 = vmatmul.msk.bf16.gmra.mxu1 %vm281_vm2, %v2156_v15 }
 0x595   :  { %v1088_v28 = vpop.f32.mrf.mxu1 }
 0x596   :  { %v1089_v34 = vadd.f32 %v1088_v28, %v1010_v35 }
 0x598   :  { %v2007_v44 = vmul.f32 -1.442695, %v1089_v34 }
 0x59a   :  { %2232 = vpow2.f32 %v2007_v44 }
 0x59d   :  { %v1090_v30 = vpop.f32.mrf.mxu1 }
 0x59e   :  { %v1091_v36 = vadd.f32 %v1090_v30, %v1015_v40 }
 0x5a0   :  { %v2008_v33 = vmul.f32 -1.442695, %v1091_v36  ;;  %v2233_v20 = vpop.eup %2232 }
 0x5a1   :  { %v2984_v38 = vadd.f32 1.0, %v2233_v20  ;;  %v2062_v20 = vld [vmem:[%s3362_s5 + $0xd8] sm:$0xff] }
 0x5a3   :  { %vm1129_vm3 = vweird.f32 %v2984_v38 }
 0x5a5   :  { %v1093_v39 = vpop.f32.mrf.mxu1 }
 0x5a6   :  { %v1094_v41 = vadd.f32 %v1093_v39, %v1020_v26 }
 0x5a8   :  { %v2009_v31 = vmul.f32 -1.442695, %v1094_v41 }
 0x5aa   :  { %2234 = vpow2.f32 %v2009_v31 }
 0x5ab   :  { %2236 = vpow2.f32 %v2008_v33 }
 0x5ad   :  { %v1095_v45 = vpop.f32.mrf.mxu1 }
 0x5ae   :  { %v1096_v47 = vadd.f32 %v1095_v45, %v1025_v46 }
 0x5b0   :  { %v2010_v48 = vmul.f32 -1.442695, %v1096_v47  ;;  %v2235_v21 = vpop.eup %2234 }
 0x5b1   :  { %v2237_v32 = vpop.eup %2236  ;;  %v2986_v50 = vadd.f32 1.0, %v2235_v21 }
 0x5b2   :  { %2238 = vpow2.f32 %v2010_v48  ;;  %v2988_v53 = vadd.f32 1.0, %v2237_v32  ;;  %v1135_v48 = vand.u32 2147483648, %v2984_v38  ;;  %v1133_v32 = vand.u32 2147483647, %v2984_v38 }
 0x5b3   :  { %2240 = vrcp.f32 %v2984_v38  ;;  %vm1159_vm12 = vweird.f32 %v2986_v50  ;;  %v1165_v26 = vand.u32 2147483648, %v2986_v50  ;;  %v1163_v34 = vand.u32 2147483647, %v2986_v50 }
 0x5b4   :  { %2242 = vrcp.f32 %v2986_v50  ;;  %vm1144_vm1 = vweird.f32 %v2988_v53  ;;  %v1150_v36 = vand.u32 2147483648, %v2988_v53  ;;  %v1148_v33 = vand.u32 2147483647, %v2988_v53 }
 0x5b5   :  { %v1098_v49 = vpop.f32.mrf.mxu1  ;;  %v1166_v45 = vor.u32 1.1754944e-38, %v1165_v26  ;;  %vm1164_vm6 = vcmp.eq.f32.partialorder %v1163_v34, 8.507059e+37 }
 0x5b6   :  { %v1099_v24 = vadd.f32 %v1098_v49, %v1030_v18  ;;  %v2160_v18 = vld [vmem:[%s3363_s6 + $0x58] sm:$0xff] }
 0x5b8   :  { %v2239_v51 = vpop.eup %2238 }
 0x5b9   :  { %v2991_v54 = vadd.f32 1.0, %v2239_v51  ;;  %v2996_v57 = vpop.eup %2240 }
 0x5ba   :  { %v2998_v58 = vpop.eup %2242  ;;  %v1125_v7 = vmul.f32 %v2996_v57, %v2984_v38  ;;  %vm1130_vm0 = vweird.f32 %v2996_v57 }
 0x5bb   :  { %2244 = vrcp.f32 %v2991_v54  ;;  %v1155_v1 = vmul.f32 %v2998_v58, %v2986_v50  ;;  %vm1160_vm10 = vweird.f32 %v2998_v58  ;;  %v1180_v30 = vand.u32 2147483648, %v2991_v54  ;;  %vm1131_vm8 = vmor %vm1129_vm3, %vm1130_vm0 }
 0x5bc   :  { %2246 = vrcp.f32 %v2988_v53  ;;  %v1126_v60 = vsub.f32 1.0, %v1125_v7  ;;  %vm3024_vm13 = vmor %vm1159_vm12, %vm1160_vm10  ;;  %vm1174_vm14 = vweird.f32 %v2991_v54  ;;  %v1178_v39 = vand.u32 2147483647, %v2991_v54 }
 0x5bd   :  { %v1100_v55 = vpop.f32.mrf.mxu1  ;;  %v1156_v9 = vsub.f32 1.0, %v1155_v1  ;;  %v1181_v47 = vor.u32 1.1754944e-38, %v1180_v30  ;;  %v1136_v1 = vor.u32 1.1754944e-38, %v1135_v48  ;;  %vm1134_vm10 = vcmp.eq.f32.partialorder %v1133_v32, 8.507059e+37  ;;  %v2059_v32 = vld [vmem:[%s3362_s5 + $0xc0] sm:$0xff] }
 0x5be   :  { %v1101_v14 = vadd.f32 %v1100_v55, %v1035_v6  ;;  %v1127_v23 = vmul.f32 %v2996_v57, %v1126_v60  ;;  %vm1179_vm7 = vcmp.eq.f32.partialorder %v1178_v39, 8.507059e+37  ;;  %v2159_v6 = vld [vmem:[%s3363_s6 + $0x50] sm:$0xff] }
 0x5bf   :  { %v1157_v0 = vmul.f32 %v2998_v58, %v1156_v9  ;;  %v2157_v9 = vld [vmem:[%s3363_s6 + $0x40] sm:$0xff] }
 0x5c0   :  { %v1128_v43 = vadd.f32 %v2996_v57, %v1127_v23 }
 0x5c1   :  { %v3000_v61 = vpop.eup %2244  ;;  %v1158_v28 = vadd.f32 %v2998_v58, %v1157_v0  ;;  %v1230_v0 = vpop.permute.xlu2 %1229 }
 0x5c2   :  { %v3002_v62 = vpop.eup %2246  ;;  %v1170_v52 = vmul.f32 %v3000_v61, %v2991_v54  ;;  %vm1175_vm11 = vweird.f32 %v3000_v61  ;;  %v1151_v54 = vor.u32 1.1754944e-38, %v1150_v36 }
 0x5c3   :  { %v1140_v8 = vmul.f32 %v3002_v62, %v2988_v53  ;;  %vm1145_vm9 = vweird.f32 %v3002_v62  ;;  %vm3032_vm15 = vmor %vm1174_vm14, %vm1175_vm11  ;;  %v1162_v44 = vsel %vm3024_vm13, %v2998_v58, %v1158_v28 }
 0x5c4   :  { %v1171_v10 = vsub.f32 1.0, %v1170_v52  ;;  %vm3051_vm5 = vmor %vm1144_vm1, %vm1145_vm9  ;;  %v1167_v51 = vsel %vm1164_vm6, %v1166_v45, %v1162_v44  ;;  %vm1149_vm9 = vcmp.eq.f32.partialorder %v1148_v33, 8.507059e+37 }
 0x5c5   :  { %v1103_v4 = vpop.f32.mrf.mxu1  ;;  %v1141_v11 = vsub.f32 1.0, %v1140_v8 }
 0x5c6   :  { %v1104_v13 = vadd.f32 %v1103_v4, %v1040_v59  ;;  %v1172_v17 = vmul.f32 %v3000_v61, %v1171_v10  ;;  %v1132_v59 = vsel %vm1131_vm8, %v2996_v57, %v1128_v43  ;;  %v2158_v57 = vld [vmem:[%s3363_s6 + $0x48] sm:$0xff]  ;;  %v3070_v10 = vpop.f32.mrf.mxu3 }
 0x5c7   :  { %v1142_v63 = vmul.f32 %v3002_v62, %v1141_v11  ;;  %v1137_v8 = vsel %vm1134_vm10, %v1136_v1, %v1132_v59  ;;  %v2025_v59 = vld [vmem:[%s3364_s7 + $0xb0] sm:$0xff]  ;;  %v2026_v1 = vld [vmem:[%s3364_s7 + $0xb8] sm:$0xff] }
 0x5c8   :  { %2248 = vtanh.f32 %v1104_v13  ;;  %v1173_v29 = vadd.f32 %v3000_v61, %v1172_v17  ;;  %v1225_v13 = vpop.permute.xlu1 %1224 }
 0x5c9   :  { %2250 = vtanh.f32 %v1101_v14  ;;  %v1143_v40 = vadd.f32 %v3002_v62, %v1142_v63 }
 0x5ca   :  { %v1177_v31 = vsel %vm3032_vm15, %v3000_v61, %v1173_v29 }
 0x5cb   :  { %v1147_v49 = vsel %vm3051_vm5, %v3002_v62, %v1143_v40  ;;  %v1182_v53 = vsel %vm1179_vm7, %v1181_v47, %v1177_v31 }
 0x5cc   :  { %v1152_v52 = vsel %vm1149_vm9, %v1151_v54, %v1147_v49  ;;  %v2065_v49 = vld [vmem:[%s3362_s5 + $0xf0] sm:$0xff]  ;;  %v424_v54 = vld [vmem:[%s3364_s7 + $0x38] sm:$0xff] }
 0x5cd   :  { %v1105_v19 = vpop.f32.mrf.mxu1 }
 0x5ce   :  { %v1106_v15 = vadd.f32 %v1105_v19, %v1045_v3  ;;  %v2249_v46 = vpop.eup %2248  ;;  %v3072_v60 = vpop.f32.mrf.mxu3 }
 0x5cf   :  { %v2251_v21 = vpop.eup %2250  ;;  %v1190_v55 = vmul.f32 %v2249_v46, %v1167_v51  ;;  %v1215_v3 = vpop.permute.xlu0 %1214  ;;  %v2066_v51 = vld [vmem:[%s3362_s5 + $0xf8] sm:$0xff] }
 0x5d0   :  { %2252 = vtanh.f32 %v1106_v15  ;;  %v1189_v7 = vmul.f32 %v2251_v21, %v1152_v52  ;;  %v1220_v17 = vpop.permute.xlu1 %1219  ;;  %v2060_v21 = vld [vmem:[%s3362_s5 + $0xc8] sm:$0xff] }
 0x5d1   :  { %2254 = vtanh.f32 %v1099_v24  ;;  %v1343_v24 = vpop.permute.xlu2 %1342  ;;  %v422_v52 = vld [vmem:[%s3364_s7 + $0x28] sm:$0xff] }
 0x5d6   :  { %v2253_v50 = vpop.eup %2252  ;;  %v3074_v11 = vpop.f32.mrf.mxu3 }
 0x5d7   :  { %v1191_v58 = vmul.f32 %v2253_v50, %v1182_v53  ;;  %v2255_v61 = vpop.eup %2254  ;;  %v1348_v47 = vpop.permute.xlu0 %1347  ;;  %v2063_v50 = vld [vmem:[%s3362_s5 + $0xe0] sm:$0xff]  ;;  %v2064_v53 = vld [vmem:[%s3362_s5 + $0xe8] sm:$0xff] }
 0x5d8   :  { %v1188_v62 = vmul.f32 %v2255_v61, %v1137_v8  ;;  %v1333_v28 = vpop.permute.xlu1 %1332  ;;  %v1946_v61 = vld [vmem:[%s3364_s7 + $0x78] sm:$0xff]  ;;  %v2105_v8 = vld [vmem:[%s3364_s7 + $0xf0] sm:$0xff] }
 0x5d9   :  { %v1202_v38 = vpack.c.bf16 %v1191_v58, %v1190_v55  ;;  %v1338_v39 = vpop.permute.xlu2 %1337  ;;  %v423_v55 = vld [vmem:[%s3364_s7 + $0x30] sm:$0xff] }
 0x5da   :  { %v1201_v4 = vpack.c.bf16 %v1189_v7, %v1188_v62  ;;  %v1945_v58 = vld [vmem:[%s3364_s7 + $0x70] sm:$0xff]  ;;  %v1943_v7 = vld [vmem:[%s3364_s7 + $0x60] sm:$0xff]  ;;  %v1944_v62 = vld [vmem:[%s3364_s7 + $0x68] sm:$0xff] }
 0x5db   :  { %1290 = vmatpush.bf16.msra.mxu3 %v1202_v38  ;;  %v421_v38 = vld [vmem:[%s3364_s7 + $0x20] sm:$0xff] }
 0x5de   :  { %v3080_v14 = vpop.f32.mrf.mxu3 }
 0x5df   :  { %1291 = vmatpush.bf16.msra.mxu3 %v1201_v4  ;;  %v2106_v4 = vld [vmem:[%s3364_s7 + $0xf8] sm:$0xff] }
 0x5e2   :  { %2043 = vmatmul.msk.bf16.vlgmr.msra.gmra.mxu3 %vm485_vm4, %v2157_v9  ;;  %v2024_v9 = vld [vmem:[%s3364_s7 + $0xa8] sm:$0xff] }
 0x5f2   :  { %2044 = vmatmul.msk.bf16.gmra.mxu3 %vm485_vm4, %v2158_v57  ;;  %v2023_v57 = vld [vmem:[%s3364_s7 + $0xa0] sm:$0xff] }
 0x602   :  { %2045 = vmatmul.msk.bf16.gmra.mxu3 %vm485_vm4, %v2159_v6  ;;  %v2103_v6 = vld [vmem:[%s3364_s7 + $0xe0] sm:$0xff] }
 0x612   :  { %2046 = vmatmul.msk.bf16.gmra.mxu3 %vm485_vm4, %v2160_v18  ;;  %v1717_v18 = vld [vmem:[%s3366_s9 + $0x18] sm:$0xff] }
 0x665   :  { %v1293_v19 = vpop.f32.mrf.mxu3 }
 0x666   :  { %v1294_v23 = vadd.f32 %v1293_v19, %v1215_v3  ;;  %v1716_v3 = vld [vmem:[%s3366_s9 + $0x10] sm:$0xff]  ;;  %v1777_v19 = vld [vmem:[%s3367_s10] sm:$0xff] }
 0x668   :  { %v1313_v63 = vadd.f32 %v1294_v23, %v2860_v22  ;;  %v1779_v23 = vld [vmem:[%s3367_s10 + $0x10] sm:$0xff] }
 0x66a   :  { %v1317_v15 = vmul.f32 0.70710677, %v1313_v63  ;;  %v1778_v63 = vld [vmem:[%s3367_s10 + $0x8] sm:$0xff] }
 0x66c   :  { %v3087_v29 = vadd.f32 %v1333_v28, %v1317_v15  ;;  %v1814_v15 = vld [vmem:[#allocation2] sm:$0x1] }
 0x66d   :  { %v1295_v26 = vpop.f32.mrf.mxu3 }
 0x66e   :  { %v1296_v30 = vadd.f32 %v1295_v26, %v1220_v17  ;;  %1366 = vrot.lane.b32.xlu2 %v3087_v29, %s2310_s14  ;;  %v1715_v17 = vld [vmem:[%s3366_s9 + $0x8] sm:$0xff] }
 0x670   :  { %v1314_v35 = vadd.f32 %v1296_v30, %v2868_v2 }
 0x672   :  { %v1318_v34 = vmul.f32 0.70710677, %v1314_v35 }
 0x674   :  { %v3092_v40 = vadd.f32 %v1338_v39, %v1318_v34 }
 0x675   :  { %v1298_v41 = vpop.f32.mrf.mxu3 }
 0x676   :  { %v1299_v36 = vadd.f32 %v1298_v41, %v1225_v13  ;;  %v1380_v22 = vpack.c.bf16 %v3092_v40, %v3087_v29  ;;  %v1714_v13 = vld [vmem:[%s3366_s9] sm:$0xff] }
 0x678   :  { %v1315_v44 = vadd.f32 %v1299_v36, %v2876_v37 }
 0x67a   :  { %v1319_v31 = vmul.f32 0.70710677, %v1315_v44 }
 0x67c   :  { %v3097_v43 = vadd.f32 %v1343_v24, %v1319_v31  ;;  %v1780_v24 = vld [vmem:[%s3367_s10 + $0x18] sm:$0xff] }
 0x67d   :  { %v1300_v33 = vpop.f32.mrf.mxu3 }
 0x67e   :  { %v1301_v46 = vadd.f32 %v1300_v33, %v1230_v0  ;;  %1370 = vrot.lane.b32.xlu0 %v3097_v43, %s2310_s14  ;;  %v2104_v0 = vld [vmem:[%s3364_s7 + $0xe8] sm:$0xff]  ;;  %s1830_s7 = sshll.u32 %s3369_s12, 4  ;;  %s1831_s7 = int_to_ptr.hbm [resolvable:$true] %s1830_s7 }
 0x680   :  { %v1316_v2 = vadd.f32 %v1301_v46, %v2881_v42  ;;  %v2061_v42 = vld [vmem:[%s3362_s5 + $0xd0] sm:$0xff] }
 0x682   :  { %v1320_v45 = vmul.f32 0.70710677, %v1316_v2 }
 0x684   :  { %v3102_v48 = vadd.f32 %v1348_v47, %v1320_v45 }
 0x686   :  { %1372 = vrot.lane.b32.xlu1 %v3102_v48, %s2310_s14  ;;  %1368 = vrot.lane.b32.xlu0 %v3092_v40, %s2310_s14  ;;  %v1381_v37 = vpack.c.bf16 %v3102_v48, %v3097_v43 }
 0x687   :  { %1360 = vrot.lane.b32.xlu2 %v3102_v48, %s2311_s15 }
 0x68e   :  { %1358 = vrot.lane.b32.xlu1 %v3097_v43, %s2311_s15  ;;  %1354 = vrot.lane.b32.xlu0 %v3087_v29, %s2311_s15  ;;  %v2161_v43 = vld [vmem:[%s3361_s4 + $0x60] sm:$0xff]  ;;  %v2162_v29 = vld [vmem:[%s3361_s4 + $0x68] sm:$0xff] }
 0x68f   :  { %1414 = vperm.xlu2 %2182, %v2061_v42  }
 0x696   :  { %1356 = vrot.lane.b32.xlu1 %v3092_v40, %s2311_s15  ;;  %1419 = vperm.xlu0 %2180, %v2062_v20   ;;  %v2163_v40 = vld [vmem:[%s3361_s4 + $0x70] sm:$0xff] }
 0x697   :  { %1409 = vperm.xlu2 %2182, %v2060_v21  }
 0x69e   :  { %1404 = vperm.xlu1 %2181, %v2059_v32   ;;  %1434 = vperm.xlu0 %2180, %v2065_v49  }
 0x69f   :  { %1424 = vperm.xlu2 %2182, %v2063_v50  }
 0x6a6   :  { %1439 = vperm.xlu1 %2181, %v2066_v51   ;;  %1429 = vperm.xlu0 %2180, %v2064_v53  }
 0x6a7   :  { %462 = vperm.xlu2 %2182, %v424_v54  }
 0x6ae   :  { %457 = vperm.xlu1 %2181, %v423_v55   ;;  %849 = vperm.xlu0 %2180, %v1945_v58  }
 0x6af   :  { %1244 = vperm.xlu2 %2182, %v2025_v59  }
 0x6b6   :  { %854 = vperm.xlu1 %2181, %v1946_v61   ;;  %1249 = vperm.xlu0 %2180, %v2026_v1  }
 0x6b7   :  { %452 = vperm.xlu2 %2182, %v422_v52  }
 0x6be   :  { %447 = vperm.xlu1 %2181, %v421_v38   ;;  %839 = vperm.xlu0 %2180, %v1943_v7  }
 0x6bf   :  { %1635 = vperm.xlu2 %2182, %v2105_v8  }
 0x6c6   :  { %844 = vperm.xlu1 %2181, %v1944_v62   ;;  %1640 = vperm.xlu0 %2180, %v2106_v4  }
 0x6c7   :  { %1239 = vperm.xlu2 %2182, %v2024_v9  }
 0x6c8   :  { %v1367_v39 = vpop.permute.xlu2 %1366 }
 0x6c9   :  { %v1374_v44 = vmul.f32 %v2732_v5, %v1367_v39 }
 0x6ce   :  { %1234 = vperm.xlu1 %2181, %v2023_v57   ;;  %1625 = vperm.xlu0 %2180, %v2103_v6  }
 0x6cf   :  { %1720 = vperm.xlu2 %2182, %v1714_v13  }
 0x6d6   :  { %1630 = vperm.xlu1 %2181, %v2104_v0   ;;  %1725 = vperm.xlu0 %2180, %v1715_v17  }
 0x6d7   :  { %1735 = vperm.xlu2 %2182, %v1717_v18  }
 0x6de   :  { %1730 = vperm.xlu1 %2181, %v1716_v3   ;;  %1783 = vperm.xlu0 %2180, %v1777_v19  }
 0x6df   :  { %1793 = vperm.xlu2 %2182, %v1779_v23  }
 0x6e1   :  { %v1361_v46 = vpop.permute.xlu2 %1360 }
 0x6e2   :  { %v1365_v47 = vmul.f32 %v2740_v16, %v1361_v46 }
 0x6e6   :  { %1788 = vperm.xlu1 %2181, %v1778_v63   ;;  %1798 = vperm.xlu0 %2180, %v1780_v24  }
 0x6e9   :  { %v1415_v48 = vpop.permute.xlu2 %1414 }
 0x6ee   :  { %1817 = vperm.xlu1 %2181, %v1814_v15  }
 0x6f0   :  { %v1371_v28 = vpop.permute.xlu0 %1370 }
 0x6f1   :  { %v1376_v35 = vmul.f32 %v2732_v5, %v1371_v28  ;;  %v1410_v53 = vpop.permute.xlu2 %1409 }
 0x6f8   :  { %v1373_v26 = vpop.permute.xlu1 %1372  ;;  %v1369_v30 = vpop.permute.xlu0 %1368 }
 0x6f9   :  { %v1377_v34 = vmul.f32 %v2732_v5, %v1373_v26  ;;  %v1375_v41 = vmul.f32 %v2732_v5, %v1369_v30 }
 0x6fb   :  { %v1383_v36 = vpack.c.bf16 %v1377_v34, %v1376_v35  ;;  %v1382_v31 = vpack.c.bf16 %v1375_v41, %v1374_v44 }
 0x6fd   :  { %1476 = vmatpush.bf16.msrb.mxu0 %v1383_v36 }
 0x700   :  { %v1359_v33 = vpop.permute.xlu1 %1358  ;;  %v1355_v42 = vpop.permute.xlu0 %1354 }
 0x701   :  { %1477 = vmatpush.bf16.msrb.mxu0 %v1382_v31  ;;  %v1364_v2 = vmul.f32 %v2740_v16, %v1359_v33  ;;  %v1362_v21 = vmul.f32 %v2740_v16, %v1355_v42 }
 0x703   :  { %v1379_v20 = vpack.c.bf16 %v1365_v47, %v1364_v2 }
 0x705   :  { %1478 = vmatpush.bf16.msrb.mxu0 %v1381_v37 }
 0x708   :  { %v1357_v45 = vpop.permute.xlu1 %1356  ;;  %v1420_v1 = vpop.permute.xlu0 %1419 }
 0x709   :  { %1479 = vmatpush.bf16.msrb.mxu0 %v1380_v22  ;;  %v1363_v5 = vmul.f32 %v2740_v16, %v1357_v45  ;;  %v2164_v16 = vld [vmem:[%s3361_s4 + $0x78] sm:$0xff]  ;;  %v1425_v45 = vpop.permute.xlu2 %1424 }
 0x70b   :  { %v1378_v32 = vpack.c.bf16 %v1363_v5, %v1362_v21 }
 0x70d   :  { %1480 = vmatpush.bf16.msrb.mxu0 %v1379_v20 }
 0x710   :  { %v1405_v49 = vpop.permute.xlu1 %1404  ;;  %v1435_v23 = vpop.permute.xlu0 %1434 }
 0x711   :  { %1481 = vmatpush.bf16.msrb.mxu0 %v1378_v32 }
 0x714   :  { %2083 = vmatmul.msk.bf16.vlgmr.msrb.gmra.mxu0 %vm281_vm2, %v2161_v43 }
 0x718   :  { %v1430_v44 = vpop.permute.xlu0 %1429  ;;  %v1440_v47 = vpop.permute.xlu1 %1439 }
 0x724   :  { %2084 = vmatmul.msk.bf16.gmra.mxu0 %vm281_vm2, %v2162_v29 }
 0x734   :  { %2085 = vmatmul.msk.bf16.gmra.mxu0 %vm281_vm2, %v2163_v40 }
 0x744   :  { %2086 = vmatmul.msk.bf16.gmra.mxu0 %vm281_vm2, %v2164_v16 }
 0x791   :  { %v1483_v22 = vpop.f32.mrf.mxu0 }
 0x792   :  { %v1484_v50 = vadd.f32 %v1483_v22, %v1405_v49 }
 0x794   :  { %v2087_v58 = vmul.f32 -1.442695, %v1484_v50 }
 0x796   :  { %2256 = vpow2.f32 %v2087_v58 }
 0x799   :  { %v1485_v37 = vpop.f32.mrf.mxu0 }
 0x79a   :  { %v1486_v55 = vadd.f32 %v1485_v37, %v1410_v53 }
 0x79c   :  { %v2088_v61 = vmul.f32 -1.442695, %v1486_v55  ;;  %v2257_v8 = vpop.eup %2256 }
 0x79d   :  { %v3244_v9 = vadd.f32 1.0, %v2257_v8 }
 0x79f   :  { %vm1524_vm5 = vweird.f32 %v3244_v9  ;;  %v1528_v8 = vand.u32 2147483647, %v3244_v9 }
 0x7a1   :  { %v1488_v51 = vpop.f32.mrf.mxu0 }
 0x7a2   :  { %v1489_v54 = vadd.f32 %v1488_v51, %v1415_v48 }
 0x7a4   :  { %v2089_v59 = vmul.f32 -1.442695, %v1489_v54 }
 0x7a6   :  { %2258 = vpow2.f32 %v2089_v59 }
 0x7a7   :  { %2260 = vpow2.f32 %v2088_v61 }
 0x7a9   :  { %v1490_v52 = vpop.f32.mrf.mxu0 }
 0x7aa   :  { %v1491_v38 = vadd.f32 %v1490_v52, %v1420_v1  ;;  %v1530_v52 = vand.u32 2147483648, %v3244_v9 }
 0x7ac   :  { %v2090_v7 = vmul.f32 -1.442695, %v1491_v38  ;;  %v2259_v62 = vpop.eup %2258 }
 0x7ad   :  { %v2261_v4 = vpop.eup %2260  ;;  %v3246_v6 = vadd.f32 1.0, %v2259_v62 }
 0x7ae   :  { %2262 = vpow2.f32 %v2090_v7  ;;  %v3248_v0 = vadd.f32 1.0, %v2261_v4 }
 0x7af   :  { %2264 = vrcp.f32 %v3244_v9  ;;  %vm1554_vm13 = vweird.f32 %v3246_v6  ;;  %v1560_v40 = vand.u32 2147483648, %v3246_v6  ;;  %v1558_v48 = vand.u32 2147483647, %v3246_v6 }
 0x7b0   :  { %2266 = vrcp.f32 %v3246_v6  ;;  %vm1539_vm3 = vweird.f32 %v3248_v0  ;;  %v1545_v51 = vand.u32 2147483648, %v3248_v0  ;;  %v1543_v58 = vand.u32 2147483647, %v3248_v0 }
 0x7b1   :  { %v1493_v57 = vpop.f32.mrf.mxu0  ;;  %v1561_v61 = vor.u32 1.1754944e-38, %v1560_v40  ;;  %vm1559_vm7 = vcmp.eq.f32.partialorder %v1558_v48, 8.507059e+37 }
 0x7b2   :  { %v1494_v21 = vadd.f32 %v1493_v57, %v1425_v45  ;;  %vm1544_vm10 = vcmp.eq.f32.partialorder %v1543_v58, 8.507059e+37  ;;  %v1303_v45 = vpop.f32.mrf.mxu3 }
 0x7b4   :  { %v2263_v13 = vpop.eup %2262 }
 0x7b5   :  { %v3251_v17 = vadd.f32 1.0, %v2263_v13  ;;  %v3256_v3 = vpop.eup %2264  ;;  %v1546_v13 = vor.u32 1.1754944e-38, %v1545_v51 }
 0x7b6   :  { %v3258_v19 = vpop.eup %2266  ;;  %v1520_v30 = vmul.f32 %v3256_v3, %v3244_v9  ;;  %vm1525_vm1 = vweird.f32 %v3256_v3 }
 0x7b7   :  { %2268 = vrcp.f32 %v3251_v17  ;;  %v1550_v15 = vmul.f32 %v3258_v19, %v3246_v6  ;;  %vm1555_vm11 = vweird.f32 %v3258_v19  ;;  %v1575_v16 = vand.u32 2147483648, %v3251_v17  ;;  %vm1526_vm9 = vmor %vm1524_vm5, %vm1525_vm1 }
 0x7b8   :  { %2270 = vrcp.f32 %v3248_v0  ;;  %v1521_v41 = vsub.f32 1.0, %v1520_v30  ;;  %vm3284_vm14 = vmor %vm1554_vm13, %vm1555_vm11  ;;  %vm1569_vm15 = vweird.f32 %v3251_v17  ;;  %v1573_v37 = vand.u32 2147483647, %v3251_v17  ;;  %v2165_v30 = vld [vmem:[%s3363_s6 + $0x60] sm:$0xff] }
 0x7b9   :  { %v1495_v18 = vpop.f32.mrf.mxu0  ;;  %v1551_v34 = vsub.f32 1.0, %v1550_v15  ;;  %v1576_v1 = vor.u32 1.1754944e-38, %v1575_v16 }
 0x7ba   :  { %v1496_v33 = vadd.f32 %v1495_v18, %v1430_v44  ;;  %v1522_v5 = vmul.f32 %v3256_v3, %v1521_v41  ;;  %vm1574_vm8 = vcmp.eq.f32.partialorder %v1573_v37, 8.507059e+37  ;;  %v458_v41 = vpop.permute.xlu1 %457  ;;  %v463_v44 = vpop.permute.xlu2 %462 }
 0x7bb   :  { %v1552_v46 = vmul.f32 %v3258_v19, %v1551_v34  ;;  %v2168_v34 = vld [vmem:[%s3363_s6 + $0x78] sm:$0xff] }
 0x7bc   :  { %v1523_v55 = vadd.f32 %v3256_v3, %v1522_v5 }
 0x7bd   :  { %v3260_v63 = vpop.eup %2268  ;;  %v1553_v43 = vadd.f32 %v3258_v19, %v1552_v46 }
 0x7be   :  { %v3262_v24 = vpop.eup %2270  ;;  %v1565_v28 = vmul.f32 %v3260_v63, %v3251_v17  ;;  %vm1570_vm12 = vweird.f32 %v3260_v63  ;;  %v1527_v18 = vsel %vm1526_vm9, %v3256_v3, %v1523_v55  ;;  %v2166_v3 = vld [vmem:[%s3363_s6 + $0x68] sm:$0xff]  ;;  %v525_v55 = vadd.f32 %v2857_v12, %v463_v44 }
 0x7bf   :  { %v1535_v35 = vmul.f32 %v3262_v24, %v3248_v0  ;;  %vm1540_vm2 = vweird.f32 %v3262_v24  ;;  %vm3292_vm0 = vmor %vm1569_vm15, %vm1570_vm12  ;;  %v1557_v53 = vsel %vm3284_vm14, %v3258_v19, %v1553_v43 }
 0x7c0   :  { %v1566_v39 = vsub.f32 1.0, %v1565_v28  ;;  %vm3311_vm6 = vmor %vm1539_vm3, %vm1540_vm2  ;;  %v1562_v57 = vsel %vm1559_vm7, %v1561_v61, %v1557_v53  ;;  %vm1529_vm2 = vcmp.eq.f32.partialorder %v1528_v8, 8.507059e+37 }
 0x7c1   :  { %v1498_v26 = vpop.f32.mrf.mxu0  ;;  %v1536_v36 = vsub.f32 1.0, %v1535_v35  ;;  %v2167_v35 = vld [vmem:[%s3363_s6 + $0x70] sm:$0xff] }
 0x7c2   :  { %v1499_v31 = vadd.f32 %v1498_v26, %v1435_v23  ;;  %v1567_v2 = vmul.f32 %v3260_v63, %v1566_v39  ;;  %v1531_v23 = vor.u32 1.1754944e-38, %v1530_v52 }
 0x7c3   :  { %v1537_v20 = vmul.f32 %v3262_v24, %v1536_v36 }
 0x7c4   :  { %2272 = vtanh.f32 %v1499_v31  ;;  %v1568_v29 = vadd.f32 %v3260_v63, %v1567_v2  ;;  %v1532_v28 = vsel %vm1529_vm2, %v1531_v23, %v1527_v18  ;;  %v855_v31 = vpop.permute.xlu1 %854  ;;  %v1245_v2 = vpop.permute.xlu2 %1244 }
 0x7c5   :  { %2274 = vtanh.f32 %v1496_v33  ;;  %v1538_v49 = vadd.f32 %v3262_v24, %v1537_v20  ;;  %v850_v33 = vpop.permute.xlu0 %849  ;;  %v916_v51 = vadd.f32 %v3080_v14, %v855_v31 }
 0x7c6   :  { %v1572_v54 = vsel %vm3292_vm0, %v3260_v63, %v1568_v29  ;;  %v914_v50 = vadd.f32 %v3074_v11, %v850_v33 }
 0x7c7   :  { %v1542_v62 = vsel %vm3311_vm6, %v3262_v24, %v1538_v49  ;;  %v1577_v6 = vsel %vm1574_vm8, %v1576_v1, %v1572_v54  ;;  %v523_v49 = vadd.f32 %v2855_v56, %v458_v41  ;;  %v929_v52 = vadd.f32 %v916_v51, %v525_v55 }
 0x7c8   :  { %v1547_v63 = vsel %vm1544_vm10, %v1546_v13, %v1542_v62 }
 0x7c9   :  { %v1500_v42 = vpop.f32.mrf.mxu0 }
 0x7ca   :  { %v1501_v32 = vadd.f32 %v1500_v42, %v1440_v47  ;;  %v2273_v59 = vpop.eup %2272 }
 0x7cb   :  { %v2275_v7 = vpop.eup %2274  ;;  %v1585_v0 = vmul.f32 %v2273_v59, %v1562_v57  ;;  %v928_v59 = vadd.f32 %v914_v50, %v523_v49 }
 0x7cc   :  { %2276 = vtanh.f32 %v1501_v32  ;;  %v1584_v15 = vmul.f32 %v2275_v7, %v1547_v63  ;;  %v448_v47 = vpop.permute.xlu1 %447  ;;  %v453_v20 = vpop.permute.xlu2 %452 }
 0x7cd   :  { %2278 = vtanh.f32 %v1494_v21  ;;  %v1250_v5 = vpop.permute.xlu0 %1249  ;;  %v1305_v32 = vpop.f32.mrf.mxu3  ;;  %v520_v58 = vadd.f32 %v2974_v27, %v453_v20  ;;  %v518_v38 = vadd.f32 %v2972_v25, %v448_v47 }
 0x7d2   :  { %v2277_v4 = vpop.eup %2276 }
 0x7d3   :  { %v1586_v17 = vmul.f32 %v2277_v4, %v1577_v6  ;;  %v2279_v19 = vpop.eup %2278 }
 0x7d4   :  { %v1583_v24 = vmul.f32 %v2279_v19, %v1532_v28  ;;  %v845_v43 = vpop.permute.xlu1 %844  ;;  %v1636_v16 = vpop.permute.xlu2 %1635 }
 0x7d5   :  { %v1597_v9 = vpack.c.bf16 %v1586_v17, %v1585_v0  ;;  %v840_v29 = vpop.permute.xlu0 %839  ;;  %v1308_v22 = vpop.f32.mrf.mxu3  ;;  %v911_v54 = vadd.f32 %v3072_v60, %v845_v43 }
 0x7d6   :  { %v1596_v26 = vpack.c.bf16 %v1584_v15, %v1583_v24  ;;  %v909_v7 = vadd.f32 %v3070_v10, %v840_v29  ;;  %v1309_v56 = vadd.f32 %v1308_v22, %v1245_v2 }
 0x7d7   :  { %1681 = vmatpush.bf16.msrb.mxu2 %v1597_v9  ;;  %v927_v8 = vadd.f32 %v911_v54, %v520_v58 }
 0x7d8   :  { %v1323_v6 = vadd.f32 %v1309_v56, %v928_v59  ;;  %v926_v13 = vadd.f32 %v909_v7, %v518_v38 }
 0x7db   :  { %1682 = vmatpush.bf16.msrb.mxu2 %v1596_v26 }
 0x7dc   :  { %v1235_v48 = vpop.permute.xlu1 %1234  ;;  %v1240_v1 = vpop.permute.xlu2 %1239 }
 0x7dd   :  { %v1641_v37 = vpop.permute.xlu0 %1640  ;;  %v1310_v61 = vpop.f32.mrf.mxu3  ;;  %v1306_v4 = vadd.f32 %v1305_v32, %v1240_v1  ;;  %v1304_v57 = vadd.f32 %v1303_v45, %v1235_v48 }
 0x7de   :  { %2123 = vmatmul.msk.bf16.vlgmr.msrb.gmra.mxu2 %vm485_vm4, %v2165_v30  ;;  %v1311_v62 = vadd.f32 %v1310_v61, %v1250_v5 }
 0x7df   :  { %v1322_v18 = vadd.f32 %v1306_v4, %v927_v8  ;;  %v1321_v25 = vadd.f32 %v1304_v57, %v926_v13 }
 0x7e0   :  { %v1324_v12 = vadd.f32 %v1311_v62, %v929_v52 }
 0x7e4   :  { %v1631_v14 = vpop.permute.xlu1 %1630  ;;  %v1721_v41 = vpop.permute.xlu2 %1720 }
 0x7e5   :  { %v1626_v27 = vpop.permute.xlu0 %1625 }
 0x7ec   :  { %v1731_v31 = vpop.permute.xlu1 %1730  ;;  %v1736_v33 = vpop.permute.xlu2 %1735 }
 0x7ee   :  { %2124 = vmatmul.msk.bf16.gmra.mxu2 %vm485_vm4, %v2166_v3 }
 0x7f4   :  { %v1789_v32 = vpop.permute.xlu1 %1788  ;;  %v1794_v29 = vpop.permute.xlu2 %1793 }
 0x7fc   :  { %v1818_v1 = vpop.permute.xlu1 %1817 }
 0x7fd   :  { %v1820_v38 = vperm.slane %v1818_v1, 0 }
 0x7fe   :  { %2125 = vmatmul.msk.bf16.gmra.mxu2 %vm485_vm4, %v2167_v35  ;;  %v2169_v35 = vld [vmem:[%s3365_s8] sm:$0xff] }
 0x80e   :  { %2126 = vmatmul.msk.bf16.gmra.mxu2 %vm485_vm4, %v2168_v34  ;;  %v2170_v34 = vld [vmem:[%s3365_s8 + $0x8] sm:$0xff]  ;;  %s2312_s8 = smov [#allocation3]  }
 0x80f   :  { %s1828_s23 = sshll.u32 %s2312_s8, 4  ;;  %s1829_s23 = int_to_ptr.vmem [resolvable:$true] %s1828_s23 }
 0x861   :  { %v1684_v39 = vpop.f32.mrf.mxu2 }
 0x869   :  { %v1685_v36 = vpop.f32.mrf.mxu2 }
 0x86a   :  { %v1726_v36 = vpop.permute.xlu0 %1725 }
 0x871   :  { %v1687_v46 = vpop.f32.mrf.mxu2 }
 0x879   :  { %v1688_v42 = vpop.f32.mrf.mxu2 }
 0x87a   :  { %v1784_v42 = vpop.permute.xlu0 %1783 }
 0x881   :  { %v1690_v21 = vpop.f32.mrf.mxu2 }
 0x882   :  { %v1691_v17 = vadd.f32 %v1690_v21, %v1626_v27  ;;  %v1799_v50 = vpop.permute.xlu0 %1798 }
 0x884   :  { %v1700_v9 = vadd.f32 %v1691_v17, %v1321_v25 }
 0x886   :  { %v1704_v30 = vmul.f32 0.5, %v1700_v9 }
 0x889   :  { %v1692_v40 = vpop.f32.mrf.mxu2 }
 0x88a   :  { %v1693_v60 = vadd.f32 %v1692_v40, %v1631_v14 }
 0x88c   :  { %v1701_v63 = vadd.f32 %v1693_v60, %v1322_v18 }
 0x88e   :  { %v1705_v24 = vmul.f32 0.5, %v1701_v63 }
 0x890   :  { %v1712_v3 = vpack.c.bf16 %v1705_v24, %v1704_v30 }
 0x891   :  { %v1695_v53 = vpop.f32.mrf.mxu2 }
 0x892   :  { %v1696_v11 = vadd.f32 %v1695_v53, %v1636_v16 }
 0x894   :  { %v1702_v19 = vadd.f32 %v1696_v11, %v1323_v6 }
 0x896   :  { %v1706_v15 = vmul.f32 0.5, %v1702_v19 }
 0x899   :  { %v1697_v0 = vpop.f32.mrf.mxu2 }
 0x89a   :  { %v1698_v23 = vadd.f32 %v1697_v0, %v1641_v37 }
 0x89c   :  { %v1703_v10 = vadd.f32 %v1698_v23, %v1324_v12 }
 0x89e   :  { %v1707_v28 = vmul.f32 0.5, %v1703_v10 }
 0x8a0   :  { %v1713_v26 = vpack.c.bf16 %v1707_v28, %v1706_v15 }
 0x8a2   :  { %1760 = vmatpush.bf16.msra.mxu1 %v1713_v26 }
 0x8a6   :  { %1761 = vmatpush.bf16.msra.mxu1 %v1712_v3 }
 0x8a9   :  { %2135 = vmatmul.msk.bf16.vlgmr.msra.gmra.mxu1 %vm485_vm4, %v2169_v35 }
 0x8b9   :  { %2136 = vmatmul.msk.bf16.gmra.mxu1 %vm485_vm4, %v2170_v34 }
 0x926   :  { %v1763_v39 = vpop.f32.mrf.mxu1 }
 0x927   :  { %v1764_v45 = vadd.f32 %v1763_v39, %v1721_v41 }
 0x929   :  { %v1773_v20 = vmax.f32 %v1764_v45, 0.0 }
 0x92b   :  { %v1801_v16 = vmul.f32 %v1784_v42, %v1773_v20 }
 0x92e   :  { %v1765_v44 = vpop.f32.mrf.mxu1 }
 0x92f   :  { %v1766_v46 = vadd.f32 %v1765_v44, %v1726_v36 }
 0x931   :  { %v1774_v5 = vmax.f32 %v1766_v46, 0.0 }
 0x933   :  { %v1802_v43 = vmul.f32 %v1789_v32, %v1774_v5 }
 0x935   :  { %v1805_v37 = vadd.f32 %v1802_v43, %v1801_v16 }
 0x936   :  { %v1768_v2 = vpop.f32.mrf.mxu1 }
 0x937   :  { %v1769_v47 = vadd.f32 %v1768_v2, %v1731_v31 }
 0x939   :  { %v1775_v21 = vmax.f32 %v1769_v47, 0.0 }
 0x93b   :  { %v1803_v22 = vmul.f32 %v1794_v29, %v1775_v21 }
 0x93d   :  { %v1806_v51 = vadd.f32 %v1805_v37, %v1803_v22 }
 0x93e   :  { %v1770_v40 = vpop.f32.mrf.mxu1 }
 0x93f   :  { %v1771_v48 = vadd.f32 %v1770_v40, %v1736_v33 }
 0x941   :  { %v1776_v49 = vmax.f32 %v1771_v48, 0.0 }
 0x943   :  { %v1804_v53 = vmul.f32 %v1799_v50, %v1776_v49 }
 0x945   :  { %v1807_v54 = vadd.f32 %v1806_v51, %v1804_v53 }
 0x947   :  { %v1808_v55 = vrot.slane %v1807_v54, 4 }
 0x949   :  { %v1809_v58 = vadd.f32 %v1808_v55, %v1807_v54 }
 0x94b   :  { %v1810_v59 = vrot.slane %v1809_v58, 2 }
 0x94d   :  { %v1811_v61 = vadd.f32 %v1810_v59, %v1809_v58 }
 0x94f   :  { %v1812_v52 = vrot.slane %v1811_v61, 1 }
 0x951   :  { %v1813_v7 = vadd.f32 %v1812_v52, %v1811_v61 }
 0x953   :  { %v1821_v56 = vadd.f32 %v1820_v38, %v1813_v7 }
 0x955   :  { %1822 = vst [vmem:[#allocation3] sm:$0x1] %v1821_v56 }
 0x956   :  { %1833 = dma.vmem_to_hbm [thread:$0]  %s1829_s23, 16, %s1831_s7, [#allocation4]  }
 0x957   :  { %2304 = dma.done.wait [#allocation4], 16  }
 0x958   :  { %2305 = vsyncadd [#allocation4], 4294967280 }
 0x959   :  { %1838 = vsyncpa [#allocation4], 1 }

</bundles_post_ra>
